<compile_context>
chip_gen: v5e
topology: v5e:2x2
jax: 0.10.0
libtpu: 0.0.40
codegen_flags: <defaults>
</compile_context>

<pallas_src>
import math
from functools import partial

import jax
import jax.numpy as jnp
from jax import lax
from jax.experimental import pallas as pl
from jax.experimental.pallas import tpu as pltpu


# ----------------------------------------------------------------------------
# Kernel
# ----------------------------------------------------------------------------
def rhythm_kernel(
    x_ref, wx_ref, pb1_ref,          # lstm1 folded input projection
    w_h1c_ref, whh2_ref,             # recurrent weights (bf16): [whh1|wih2], whh2
    bias_ref,                        # packed (8,128) bias/weight-row slab
    w_qkv_ref, wo_ref, wd1_ref, wd2_ref,
    out_ref,
    gates1_sc,
    *, batch, seq_len, n_heads,
):
    B, S = batch, seq_len
    H1 = w_h1c_ref.shape[0]          # lstm1 hidden (64)
    H2 = whh2_ref.shape[0]           # lstm2 hidden (32) == attention embed dim
    G1 = 4 * H1
    dh = H2 // n_heads

    # ---- Phase A: embedding + pos-enc + lstm1 input projection + bias for all
    # timesteps at once: gates1[s,b,:] = x[s,b] * wx + pb1[s].
    gates1_sc[...] = x_ref[...] * wx_ref[...] + pb1_ref[...]            # (S,B,4*H1)

    w_h1c = w_h1c_ref[...]           # (H1, 4*H1 + 4*H2) bf16
    whh2 = whh2_ref[...]             # (H2, 4*H2) bf16
    b2 = bias_ref[0, :]              # (4*H2,) pre-scaled lstm2 bias

    def lstm_cell(g, c, H):
        # i/f/o columns were pre-scaled by 0.5 host-side -> single slab tanh,
        # sigmoid(x) = 0.5*(tanh(x/2)+1); the g column is unscaled -> tanh(g).
        t = jnp.tanh(g)
        i = 0.5 * (t[:, 0 * H:1 * H] + 1.0)
        f = 0.5 * (t[:, 1 * H:2 * H] + 1.0)
        gg = t[:, 2 * H:3 * H]
        o = 0.5 * (t[:, 3 * H:4 * H] + 1.0)
        c_new = f * c + i * gg
        return o * jnp.tanh(c_new), c_new

    # ---- Skewed recurrence: lstm1 step t and lstm2 step t-1 share a loop body.
    # Prologue: lstm1 step 0 (zero initial state, zero recurrent contribution).
    h1, c1 = lstm_cell(gates1_sc[0], jnp.zeros((B, H1), jnp.float32), H1)
    h2 = jnp.zeros((B, H2), jnp.float32)
    c2 = jnp.zeros((B, H2), jnp.float32)

    def step(t, carry):
        h1, c1, h2, c2 = carry
        # One fused MXU push keyed on h1: [lstm1 recurrent | lstm2 input] proj.
        fused = jnp.dot(h1.astype(jnp.bfloat16), w_h1c,
                        preferred_element_type=jnp.float32)             # (B, G1+4*H2)
        # lstm2 step t-1 (consumes h1 = lstm1 output at t-1).
        g2 = (fused[:, G1:] + b2
              + jnp.dot(h2.astype(jnp.bfloat16), whh2,
                        preferred_element_type=jnp.float32))
        h2n, c2n = lstm_cell(g2, c2, H2)
        # lstm1 step t.
        g1 = gates1_sc[t] + fused[:, :G1]
        h1n, c1n = lstm_cell(g1, c1, H1)
        return h1n, c1n, h2n, c2n

    h1, c1, h2, c2 = lax.fori_loop(1, S, step, (h1, c1, h2, c2), unroll=True)

    # Epilogue: lstm2 step S-1.
    g2 = (jnp.dot(h1.astype(jnp.bfloat16), w_h1c[:, G1:],
                  preferred_element_type=jnp.float32)
          + jnp.dot(h2.astype(jnp.bfloat16), whh2,
                    preferred_element_type=jnp.float32)
          + b2)
    h2, _ = lstm_cell(g2, c2, H2)

    # Residual: lstm2_out + lstm1_out[:, :, :H2]; only the final timestep feeds
    # the downstream attention (attended[:, -1, :]).
    z = h2 + h1[:, :H2]                                                 # (B, H2)

    # nn.MultiheadAttention with batch_first=False receives the (B,S,E) tensor
    # as (L=B, N=S, E): attention runs over the *batch* axis, independently per
    # sequence position; attended[:, -1, :] keeps only position S-1.
    qkv = (jnp.dot(z, w_qkv_ref[...], preferred_element_type=jnp.float32)
           + bias_ref[1, :3 * H2])                                      # (B, 3*H2)

    def heads(c0):  # (B, H2) slice -> (n_heads, B, dh) via one relayout
        return qkv[:, c0:c0 + H2].reshape(B, n_heads, dh).transpose(1, 0, 2)

    qh, kh, vh = heads(0), heads(H2), heads(2 * H2)
    scale = 1.0 / math.sqrt(dh)
    scores = jnp.einsum('hbd,hcd->hbc', qh, kh,
                        preferred_element_type=jnp.float32) * scale     # (h, B, B)
    m = jnp.max(scores, axis=-1, keepdims=True)
    e = jnp.exp(scores - m)
    attn = e * pl.reciprocal(jnp.sum(e, axis=-1, keepdims=True), approx=True)
    ctx = jnp.einsum('hbc,hcd->hbd', attn, vh,
                     preferred_element_type=jnp.float32)                # (h, B, dh)
    ctx = ctx.transpose(1, 0, 2).reshape(B, H2)                         # (B, H2)
    attended = (jnp.dot(ctx, wo_ref[...], preferred_element_type=jnp.float32)
                + bias_ref[2, :H2])

    # MLP head: dense1(+BN1 folded) -> relu -> dense2(+BN2 folded) -> relu
    #           -> dense3 -> sigmoid.  Dropout == identity in eval mode.
    d1 = wd1_ref.shape[1]
    d2 = wd2_ref.shape[1]
    a1 = jnp.maximum(
        jnp.dot(attended, wd1_ref[...], preferred_element_type=jnp.float32)
        + bias_ref[3, :d1], 0.0)
    a2 = jnp.maximum(
        jnp.dot(a1, wd2_ref[...], preferred_element_type=jnp.float32)
        + bias_ref[4, :d2], 0.0)
    # dense3 (d2 -> 1) as a lane reduction against the packed weight row.
    a3 = jnp.sum(a2 * bias_ref[5, :d2], axis=-1, keepdims=True) + bias_ref[6, :1]
    out_ref[...] = 0.5 * (jnp.tanh(0.5 * a3) + 1.0)                     # sigmoid


# ----------------------------------------------------------------------------
# Host-side glue (parameter-only folding / packing)
# ----------------------------------------------------------------------------
def positional_encoding(max_len, d_model):
    position = jnp.arange(max_len, dtype=jnp.float32)[:, None]
    div_term = jnp.exp(
        jnp.arange(0, d_model, 2, dtype=jnp.float32) * (-math.log(10000.0) / d_model))
    pe = jnp.zeros((max_len, d_model), jnp.float32)
    pe = pe.at[:, 0::2].set(jnp.sin(position * div_term))
    pe = pe.at[:, 1::2].set(jnp.cos(position * div_term))
    return pe


def init_params(key, sequence_length=8, hidden_dim=64):
    d_emb = 32
    H1, H2 = hidden_dim, hidden_dim // 2

    def rnd(k, shape, scale=0.1):
        return scale * jax.random.normal(k, shape, dtype=jnp.float32)

    ks = jax.random.split(key, 32)
    p = {}
    p["pe"]    = positional_encoding(sequence_length, d_emb)
    p["emb_w"] = rnd(ks[0], (1, d_emb))
    p["emb_b"] = rnd(ks[1], (1, d_emb))
    p["wih1"]  = rnd(ks[2], (d_emb, 4 * H1))
    p["whh1"]  = rnd(ks[3], (H1, 4 * H1))
    p["b1"]    = rnd(ks[4], (1, 4 * H1))
    p["wih2"]  = rnd(ks[5], (H1, 4 * H2))
    p["whh2"]  = rnd(ks[6], (H2, 4 * H2))
    p["b2"]    = rnd(ks[7], (1, 4 * H2))
    p["wq"]    = rnd(ks[8],  (H2, H2))
    p["wk"]    = rnd(ks[9],  (H2, H2))
    p["wv"]    = rnd(ks[10], (H2, H2))
    p["bq"]    = rnd(ks[11], (1, H2))
    p["bk"]    = rnd(ks[12], (1, H2))
    p["bv"]    = rnd(ks[13], (1, H2))
    p["wo"]    = rnd(ks[14], (H2, H2))
    p["bo"]    = rnd(ks[15], (1, H2))
    p["wd1"]   = rnd(ks[16], (H2, 64))
    p["bd1"]   = rnd(ks[17], (1, 64))
    p["g1"]    = 1.0 + rnd(ks[18], (1, 64))
    p["be1"]   = rnd(ks[19], (1, 64))
    p["m1"]    = rnd(ks[20], (1, 64))
    p["v1"]    = 1.0 + 0.1 * jax.random.uniform(ks[21], (1, 64), dtype=jnp.float32)
    p["wd2"]   = rnd(ks[22], (64, 32))
    p["bd2"]   = rnd(ks[23], (1, 32))
    p["g2"]    = 1.0 + rnd(ks[24], (1, 32))
    p["be2"]   = rnd(ks[25], (1, 32))
    p["m2"]    = rnd(ks[26], (1, 32))
    p["v2"]    = 1.0 + 0.1 * jax.random.uniform(ks[27], (1, 32), dtype=jnp.float32)
    p["wd3"]   = rnd(ks[28], (1, 32))     # dense3 weight as a row
    p["bd3"]   = rnd(ks[29], (1, 1))
    return p


def rhythm_forward(x, p, n_heads=4):
    """x: (B, S, 1) float32 -> (B, 1) float32."""
    B, S, _ = x.shape
    H1 = p["whh1"].shape[0]
    H2 = p["whh2"].shape[0]
    eps = 1e-5
    assert 4 * H2 <= 128 and 3 * H2 <= 128, "packed bias slab assumes rows fit in 128 lanes"

    # --- Gate pre-scaling: scale i/f/o columns (PyTorch order [i,f,g,o]) by 0.5
    # so sigmoid can be computed as 0.5*(tanh(slab)+1) with one EUP launch.
    def gate_scale(w, H):
        s = jnp.concatenate([jnp.full((H,), 0.5), jnp.full((H,), 0.5),
                             jnp.ones((H,)), jnp.full((H,), 0.5)]).astype(jnp.float32)
        return w * s

    wih1 = gate_scale(p["wih1"], H1); whh1 = gate_scale(p["whh1"], H1); b1 = gate_scale(p["b1"], H1)
    wih2 = gate_scale(p["wih2"], H2); whh2 = gate_scale(p["whh2"], H2); b2 = gate_scale(p["b2"], H2)

    # --- Fold embedding + positional encoding + lstm1 input projection + b1:
    # gates1[s,b,:] = x[b,s] * (emb_w @ wih1) + (pe[s] + emb_b) @ wih1 + b1.
    wx = jnp.dot(p["emb_w"], wih1).reshape(1, 1, 4 * H1)                 # (1,1,4*H1)
    pb1 = (jnp.dot(p["pe"] + p["emb_b"], wih1) + b1)[:, None, :]         # (S,1,4*H1)

    # --- Fused recurrent weight for the skewed loop (bf16 MXU operands).
    w_h1c = jnp.concatenate([whh1, wih2], axis=1).astype(jnp.bfloat16)   # (H1, 4*H1+4*H2)
    whh2_b = whh2.astype(jnp.bfloat16)                                   # (H2, 4*H2)

    # --- Fold eval-mode BatchNorms into dense1/dense2.
    s1 = p["g1"] * lax.rsqrt(p["v1"] + eps)
    wd1 = p["wd1"] * s1
    bd1 = p["bd1"] * s1 + p["be1"] - p["m1"] * s1
    s2 = p["g2"] * lax.rsqrt(p["v2"] + eps)
    wd2 = p["wd2"] * s2
    bd2 = p["bd2"] * s2 + p["be2"] - p["m2"] * s2

    # --- Fused QKV projection.
    w_qkv = jnp.concatenate([p["wq"], p["wk"], p["wv"]], axis=1)         # (H2, 3*H2)
    b_qkv = jnp.concatenate([p["bq"], p["bk"], p["bv"]], axis=1)         # (1, 3*H2)

    # --- Pack all remaining (1,N) rows into one (8,128) slab (one DMA).
    def pad_row(v, width=128):
        v = v.reshape(-1).astype(jnp.float32)
        return jnp.pad(v, (0, width - v.shape[0]))

    bias_slab = jnp.stack([
        pad_row(b2),        # row 0: lstm2 bias (pre-scaled)
        pad_row(b_qkv),     # row 1: fused qkv bias
        pad_row(p["bo"]),   # row 2: attention out-proj bias
        pad_row(bd1),       # row 3: dense1 + BN1 folded bias
        pad_row(bd2),       # row 4: dense2 + BN2 folded bias
        pad_row(p["wd3"]),  # row 5: dense3 weight row
        pad_row(p["bd3"]),  # row 6: dense3 bias
        jnp.zeros((128,), jnp.float32),
    ], axis=0)                                                           # (8,128)

    # Time-major input: x3[s, b, 0] = x[b, s, 0].
    x3 = jnp.transpose(x[..., 0], (1, 0))[..., None].astype(jnp.float32)  # (S,B,1)

    args = (x3, wx, pb1, w_h1c, whh2_b, bias_slab, w_qkv, p["wo"], wd1, wd2)

    vmem = pl.BlockSpec(memory_space=pltpu.MemorySpace.VMEM)
    kernel = partial(rhythm_kernel, batch=B, seq_len=S, n_heads=n_heads)
    return pl.pallas_call(
        kernel,
        out_shape=jax.ShapeDtypeStruct((B, 1), jnp.float32),
        in_specs=[vmem] * len(args),
        out_specs=vmem,
        scratch_shapes=[
            pltpu.VMEM((S, B, 4 * H1), jnp.float32),   # lstm1 input gates, all t
        ],
    )(*args)


# ----------------------------------------------------------------------------
# Demo
# ----------------------------------------------------------------------------
if __name__ == "__main__":
    B, S, hidden_dim = 4, 8, 64

    key = jax.random.PRNGKey(0)
    k_params, k_input = jax.random.split(key)

    params = init_params(k_params, sequence_length=S, hidden_dim=hidden_dim)
    x = jax.random.normal(k_input, (B, S, 1), dtype=jnp.float32)

    out = rhythm_forward(x, params)
    out = jax.block_until_ready(out)

    assert out.shape == (B, 1), out.shape
    assert bool(jnp.all(jnp.isfinite(out)))
    print("KERNEL_OK")
</pallas_src>

<mosaic_0001>
module attributes {stable_mosaic.version = 11 : i64} {
  func.func @rhythm_kernel(%arg0: memref<8x4x1xf32, #tpu.memory_space<vmem>>, %arg1: memref<1x1x256xf32, #tpu.memory_space<vmem>>, %arg2: memref<8x1x256xf32, #tpu.memory_space<vmem>>, %arg3: memref<64x384xbf16, #tpu.memory_space<vmem>>, %arg4: memref<32x128xbf16, #tpu.memory_space<vmem>>, %arg5: memref<8x128xf32, #tpu.memory_space<vmem>>, %arg6: memref<32x96xf32, #tpu.memory_space<vmem>>, %arg7: memref<32x32xf32, #tpu.memory_space<vmem>>, %arg8: memref<32x64xf32, #tpu.memory_space<vmem>>, %arg9: memref<64x32xf32, #tpu.memory_space<vmem>>, %arg10: memref<4x1xf32, #tpu.memory_space<vmem>>, %arg11: memref<8x4x256xf32, #tpu.memory_space<vmem>>) attributes {dimension_semantics = [], scalar_prefetch = 0 : i64, scratch_operands = 1 : i64, tpu.core_type = #tpu.core_type<tc>} {
    %c0 = arith.constant 0 : index
    %c0_0 = arith.constant 0 : index
    %c0_1 = arith.constant 0 : index
    %0 = vector.load %arg0[%c0, %c0_0, %c0_1] : memref<8x4x1xf32, #tpu.memory_space<vmem>>, vector<8x4x1xf32>
    %c0_2 = arith.constant 0 : index
    %c0_3 = arith.constant 0 : index
    %c0_4 = arith.constant 0 : index
    %1 = vector.load %arg1[%c0_2, %c0_3, %c0_4] : memref<1x1x256xf32, #tpu.memory_space<vmem>>, vector<1x1x256xf32>
    %2 = vector.broadcast %0 : vector<8x4x1xf32> to vector<8x4x256xf32>
    %3 = vector.broadcast %1 : vector<1x1x256xf32> to vector<8x4x256xf32>
    %4 = arith.mulf %2, %3 : vector<8x4x256xf32>
    %c0_5 = arith.constant 0 : index
    %c0_6 = arith.constant 0 : index
    %c0_7 = arith.constant 0 : index
    %5 = vector.load %arg2[%c0_5, %c0_6, %c0_7] : memref<8x1x256xf32, #tpu.memory_space<vmem>>, vector<8x1x256xf32>
    %6 = vector.broadcast %5 : vector<8x1x256xf32> to vector<8x4x256xf32>
    %7 = arith.addf %4, %6 : vector<8x4x256xf32>
    %c0_8 = arith.constant 0 : index
    %c0_9 = arith.constant 0 : index
    %c0_10 = arith.constant 0 : index
    %8 = vector.load %arg11[%c0_8, %c0_9, %c0_10] : memref<8x4x256xf32, #tpu.memory_space<vmem>>, vector<8x4x256xf32>
    tpu.vector_store %arg11[%c0_8, %c0_9, %c0_10], %7 {strides = array<i32>} : memref<8x4x256xf32, #tpu.memory_space<vmem>>, vector<8x4x256xf32>,
    %c0_11 = arith.constant 0 : index
    %c0_12 = arith.constant 0 : index
    %9 = vector.load %arg3[%c0_11, %c0_12] : memref<64x384xbf16, #tpu.memory_space<vmem>>, vector<64x384xbf16>
    %c0_13 = arith.constant 0 : index
    %c0_14 = arith.constant 0 : index
    %10 = vector.load %arg4[%c0_13, %c0_14] : memref<32x128xbf16, #tpu.memory_space<vmem>>, vector<32x128xbf16>
    %c0_15 = arith.constant 0 : index
    %c0_16 = arith.constant 0 : index
    %11 = vector.load %arg5[%c0_15, %c0_16] : memref<8x128xf32, #tpu.memory_space<vmem>>, vector<1x128xf32>
    %12 = vector.shape_cast %11 : vector<1x128xf32> to vector<128xf32>
    %c0_17 = arith.constant 0 : index
    %c0_18 = arith.constant 0 : index
    %c0_19 = arith.constant 0 : index
    %13 = vector.load %arg11[%c0_17, %c0_18, %c0_19] : memref<8x4x256xf32, #tpu.memory_space<vmem>>, vector<1x4x256xf32>
    %14 = vector.shape_cast %13 : vector<1x4x256xf32> to vector<4x256xf32>
    %cst = arith.constant 0.000000e+00 : f32
    %15 = vector.broadcast %cst : f32 to vector<4x64xf32>
    %16 = math.tanh %14 : vector<4x256xf32>
    %17 = vector.extract_strided_slice %16 {offsets = [0, 0], sizes = [4, 64], strides = [1, 1]} : vector<4x256xf32> to vector<4x64xf32>
    %cst_20 = arith.constant 1.000000e+00 : f32
    %18 = vector.broadcast %cst_20 : f32 to vector<4x64xf32>
    %19 = arith.addf %17, %18 : vector<4x64xf32>
    %cst_21 = arith.constant 5.000000e-01 : f32
    %20 = vector.broadcast %cst_21 : f32 to vector<4x64xf32>
    %21 = arith.mulf %20, %19 : vector<4x64xf32>
    %22 = vector.extract_strided_slice %16 {offsets = [0, 64], sizes = [4, 64], strides = [1, 1]} : vector<4x256xf32> to vector<4x64xf32>
    %cst_22 = arith.constant 1.000000e+00 : f32
    %23 = vector.broadcast %cst_22 : f32 to vector<4x64xf32>
    %24 = arith.addf %22, %23 : vector<4x64xf32>
    %cst_23 = arith.constant 5.000000e-01 : f32
    %25 = vector.broadcast %cst_23 : f32 to vector<4x64xf32>
    %26 = arith.mulf %25, %24 : vector<4x64xf32>
    %27 = vector.extract_strided_slice %16 {offsets = [0, 128], sizes = [4, 64], strides = [1, 1]} : vector<4x256xf32> to vector<4x64xf32>
    %28 = vector.extract_strided_slice %16 {offsets = [0, 192], sizes = [4, 64], strides = [1, 1]} : vector<4x256xf32> to vector<4x64xf32>
    %cst_24 = arith.constant 1.000000e+00 : f32
    %29 = vector.broadcast %cst_24 : f32 to vector<4x64xf32>
    %30 = arith.addf %28, %29 : vector<4x64xf32>
    %cst_25 = arith.constant 5.000000e-01 : f32
    %31 = vector.broadcast %cst_25 : f32 to vector<4x64xf32>
    %32 = arith.mulf %31, %30 : vector<4x64xf32>
    %33 = arith.mulf %26, %15 : vector<4x64xf32>
    %34 = arith.mulf %21, %27 : vector<4x64xf32>
    %35 = arith.addf %33, %34 : vector<4x64xf32>
    %36 = math.tanh %35 : vector<4x64xf32>
    %37 = arith.mulf %32, %36 : vector<4x64xf32>
    %cst_26 = arith.constant 0.000000e+00 : f32
    %38 = vector.broadcast %cst_26 : f32 to vector<4x32xf32>
    %cst_27 = arith.constant 0.000000e+00 : f32
    %39 = vector.broadcast %cst_27 : f32 to vector<4x32xf32>
    %c1_i32 = arith.constant 1 : i32
    %40 = arith.truncf %37 : vector<4x64xf32> to vector<4x64xbf16>
    %cst_28 = arith.constant dense<0.000000e+00> : vector<4x384xf32>
    %41 = tpu.matmul %40, %9, %cst_28 {dimension_numbers = #tpu.dot_dimension_numbers<[1], [0], [0], [1], [0, 0, 1, 1], [], []>} : vector<4x64xbf16>, vector<64x384xbf16>, vector<4x384xf32> -> vector<4x384xf32>
    %42 = vector.extract_strided_slice %41 {offsets = [0, 256], sizes = [4, 128], strides = [1, 1]} : vector<4x384xf32> to vector<4x128xf32>
    %43 = vector.shape_cast %12 : vector<128xf32> to vector<1x128xf32>
    %44 = vector.broadcast %43 : vector<1x128xf32> to vector<4x128xf32>
    %45 = arith.addf %42, %44 : vector<4x128xf32>
    %46 = arith.truncf %38 : vector<4x32xf32> to vector<4x32xbf16>
    %cst_29 = arith.constant dense<0.000000e+00> : vector<4x128xf32>
    %47 = tpu.matmul %46, %10, %cst_29 {dimension_numbers = #tpu.dot_dimension_numbers<[1], [0], [0], [1], [0, 0, 1, 1], [], []>} : vector<4x32xbf16>, vector<32x128xbf16>, vector<4x128xf32> -> vector<4x128xf32>
    %48 = arith.addf %45, %47 : vector<4x128xf32>
    %49 = math.tanh %48 : vector<4x128xf32>
    %50 = vector.extract_strided_slice %49 {offsets = [0, 0], sizes = [4, 32], strides = [1, 1]} : vector<4x128xf32> to vector<4x32xf32>
    %cst_30 = arith.constant 1.000000e+00 : f32
    %51 = vector.broadcast %cst_30 : f32 to vector<4x32xf32>
    %52 = arith.addf %50, %51 : vector<4x32xf32>
    %cst_31 = arith.constant 5.000000e-01 : f32
    %53 = vector.broadcast %cst_31 : f32 to vector<4x32xf32>
    %54 = arith.mulf %53, %52 : vector<4x32xf32>
    %55 = vector.extract_strided_slice %49 {offsets = [0, 32], sizes = [4, 32], strides = [1, 1]} : vector<4x128xf32> to vector<4x32xf32>
    %cst_32 = arith.constant 1.000000e+00 : f32
    %56 = vector.broadcast %cst_32 : f32 to vector<4x32xf32>
    %57 = arith.addf %55, %56 : vector<4x32xf32>
    %cst_33 = arith.constant 5.000000e-01 : f32
    %58 = vector.broadcast %cst_33 : f32 to vector<4x32xf32>
    %59 = arith.mulf %58, %57 : vector<4x32xf32>
    %60 = vector.extract_strided_slice %49 {offsets = [0, 64], sizes = [4, 32], strides = [1, 1]} : vector<4x128xf32> to vector<4x32xf32>
    %61 = vector.extract_strided_slice %49 {offsets = [0, 96], sizes = [4, 32], strides = [1, 1]} : vector<4x128xf32> to vector<4x32xf32>
    %cst_34 = arith.constant 1.000000e+00 : f32
    %62 = vector.broadcast %cst_34 : f32 to vector<4x32xf32>
    %63 = arith.addf %61, %62 : vector<4x32xf32>
    %cst_35 = arith.constant 5.000000e-01 : f32
    %64 = vector.broadcast %cst_35 : f32 to vector<4x32xf32>
    %65 = arith.mulf %64, %63 : vector<4x32xf32>
    %66 = arith.mulf %59, %39 : vector<4x32xf32>
    %67 = arith.mulf %54, %60 : vector<4x32xf32>
    %68 = arith.addf %66, %67 : vector<4x32xf32>
    %69 = math.tanh %68 : vector<4x32xf32>
    %70 = arith.mulf %65, %69 : vector<4x32xf32>
    %71 = arith.index_cast %c1_i32 : i32 to index
    %c0_36 = arith.constant 0 : index
    %c0_37 = arith.constant 0 : index
    %72 = vector.load %arg11[%71, %c0_36, %c0_37] : memref<8x4x256xf32, #tpu.memory_space<vmem>>, vector<1x4x256xf32>
    %73 = vector.shape_cast %72 : vector<1x4x256xf32> to vector<4x256xf32>
    %74 = vector.extract_strided_slice %41 {offsets = [0, 0], sizes = [4, 256], strides = [1, 1]} : vector<4x384xf32> to vector<4x256xf32>
    %75 = arith.addf %73, %74 : vector<4x256xf32>
    %76 = math.tanh %75 : vector<4x256xf32>
    %77 = vector.extract_strided_slice %76 {offsets = [0, 0], sizes = [4, 64], strides = [1, 1]} : vector<4x256xf32> to vector<4x64xf32>
    %cst_38 = arith.constant 1.000000e+00 : f32
    %78 = vector.broadcast %cst_38 : f32 to vector<4x64xf32>
    %79 = arith.addf %77, %78 : vector<4x64xf32>
    %cst_39 = arith.constant 5.000000e-01 : f32
    %80 = vector.broadcast %cst_39 : f32 to vector<4x64xf32>
    %81 = arith.mulf %80, %79 : vector<4x64xf32>
    %82 = vector.extract_strided_slice %76 {offsets = [0, 64], sizes = [4, 64], strides = [1, 1]} : vector<4x256xf32> to vector<4x64xf32>
    %cst_40 = arith.constant 1.000000e+00 : f32
    %83 = vector.broadcast %cst_40 : f32 to vector<4x64xf32>
    %84 = arith.addf %82, %83 : vector<4x64xf32>
    %cst_41 = arith.constant 5.000000e-01 : f32
    %85 = vector.broadcast %cst_41 : f32 to vector<4x64xf32>
    %86 = arith.mulf %85, %84 : vector<4x64xf32>
    %87 = vector.extract_strided_slice %76 {offsets = [0, 128], sizes = [4, 64], strides = [1, 1]} : vector<4x256xf32> to vector<4x64xf32>
    %88 = vector.extract_strided_slice %76 {offsets = [0, 192], sizes = [4, 64], strides = [1, 1]} : vector<4x256xf32> to vector<4x64xf32>
    %cst_42 = arith.constant 1.000000e+00 : f32
    %89 = vector.broadcast %cst_42 : f32 to vector<4x64xf32>
    %90 = arith.addf %88, %89 : vector<4x64xf32>
    %cst_43 = arith.constant 5.000000e-01 : f32
    %91 = vector.broadcast %cst_43 : f32 to vector<4x64xf32>
    %92 = arith.mulf %91, %90 : vector<4x64xf32>
    %93 = arith.mulf %86, %35 : vector<4x64xf32>
    %94 = arith.mulf %81, %87 : vector<4x64xf32>
    %95 = arith.addf %93, %94 : vector<4x64xf32>
    %96 = math.tanh %95 : vector<4x64xf32>
    %97 = arith.mulf %92, %96 : vector<4x64xf32>
    %c2_i32 = arith.constant 2 : i32
    %98 = arith.truncf %97 : vector<4x64xf32> to vector<4x64xbf16>
    %cst_44 = arith.constant dense<0.000000e+00> : vector<4x384xf32>
    %99 = tpu.matmul %98, %9, %cst_44 {dimension_numbers = #tpu.dot_dimension_numbers<[1], [0], [0], [1], [0, 0, 1, 1], [], []>} : vector<4x64xbf16>, vector<64x384xbf16>, vector<4x384xf32> -> vector<4x384xf32>
    %100 = vector.extract_strided_slice %99 {offsets = [0, 256], sizes = [4, 128], strides = [1, 1]} : vector<4x384xf32> to vector<4x128xf32>
    %101 = vector.shape_cast %12 : vector<128xf32> to vector<1x128xf32>
    %102 = vector.broadcast %101 : vector<1x128xf32> to vector<4x128xf32>
    %103 = arith.addf %100, %102 : vector<4x128xf32>
    %104 = arith.truncf %70 : vector<4x32xf32> to vector<4x32xbf16>
    %cst_45 = arith.constant dense<0.000000e+00> : vector<4x128xf32>
    %105 = tpu.matmul %104, %10, %cst_45 {dimension_numbers = #tpu.dot_dimension_numbers<[1], [0], [0], [1], [0, 0, 1, 1], [], []>} : vector<4x32xbf16>, vector<32x128xbf16>, vector<4x128xf32> -> vector<4x128xf32>
    %106 = arith.addf %103, %105 : vector<4x128xf32>
    %107 = math.tanh %106 : vector<4x128xf32>
    %108 = vector.extract_strided_slice %107 {offsets = [0, 0], sizes = [4, 32], strides = [1, 1]} : vector<4x128xf32> to vector<4x32xf32>
    %cst_46 = arith.constant 1.000000e+00 : f32
    %109 = vector.broadcast %cst_46 : f32 to vector<4x32xf32>
    %110 = arith.addf %108, %109 : vector<4x32xf32>
    %cst_47 = arith.constant 5.000000e-01 : f32
    %111 = vector.broadcast %cst_47 : f32 to vector<4x32xf32>
    %112 = arith.mulf %111, %110 : vector<4x32xf32>
    %113 = vector.extract_strided_slice %107 {offsets = [0, 32], sizes = [4, 32], strides = [1, 1]} : vector<4x128xf32> to vector<4x32xf32>
    %cst_48 = arith.constant 1.000000e+00 : f32
    %114 = vector.broadcast %cst_48 : f32 to vector<4x32xf32>
    %115 = arith.addf %113, %114 : vector<4x32xf32>
    %cst_49 = arith.constant 5.000000e-01 : f32
    %116 = vector.broadcast %cst_49 : f32 to vector<4x32xf32>
    %117 = arith.mulf %116, %115 : vector<4x32xf32>
    %118 = vector.extract_strided_slice %107 {offsets = [0, 64], sizes = [4, 32], strides = [1, 1]} : vector<4x128xf32> to vector<4x32xf32>
    %119 = vector.extract_strided_slice %107 {offsets = [0, 96], sizes = [4, 32], strides = [1, 1]} : vector<4x128xf32> to vector<4x32xf32>
    %cst_50 = arith.constant 1.000000e+00 : f32
    %120 = vector.broadcast %cst_50 : f32 to vector<4x32xf32>
    %121 = arith.addf %119, %120 : vector<4x32xf32>
    %cst_51 = arith.constant 5.000000e-01 : f32
    %122 = vector.broadcast %cst_51 : f32 to vector<4x32xf32>
    %123 = arith.mulf %122, %121 : vector<4x32xf32>
    %124 = arith.mulf %117, %68 : vector<4x32xf32>
    %125 = arith.mulf %112, %118 : vector<4x32xf32>
    %126 = arith.addf %124, %125 : vector<4x32xf32>
    %127 = math.tanh %126 : vector<4x32xf32>
    %128 = arith.mulf %123, %127 : vector<4x32xf32>
    %129 = arith.index_cast %c2_i32 : i32 to index
    %c0_52 = arith.constant 0 : index
    %c0_53 = arith.constant 0 : index
    %130 = vector.load %arg11[%129, %c0_52, %c0_53] : memref<8x4x256xf32, #tpu.memory_space<vmem>>, vector<1x4x256xf32>
    %131 = vector.shape_cast %130 : vector<1x4x256xf32> to vector<4x256xf32>
    %132 = vector.extract_strided_slice %99 {offsets = [0, 0], sizes = [4, 256], strides = [1, 1]} : vector<4x384xf32> to vector<4x256xf32>
    %133 = arith.addf %131, %132 : vector<4x256xf32>
    %134 = math.tanh %133 : vector<4x256xf32>
    %135 = vector.extract_strided_slice %134 {offsets = [0, 0], sizes = [4, 64], strides = [1, 1]} : vector<4x256xf32> to vector<4x64xf32>
    %cst_54 = arith.constant 1.000000e+00 : f32
    %136 = vector.broadcast %cst_54 : f32 to vector<4x64xf32>
    %137 = arith.addf %135, %136 : vector<4x64xf32>
    %cst_55 = arith.constant 5.000000e-01 : f32
    %138 = vector.broadcast %cst_55 : f32 to vector<4x64xf32>
    %139 = arith.mulf %138, %137 : vector<4x64xf32>
    %140 = vector.extract_strided_slice %134 {offsets = [0, 64], sizes = [4, 64], strides = [1, 1]} : vector<4x256xf32> to vector<4x64xf32>
    %cst_56 = arith.constant 1.000000e+00 : f32
    %141 = vector.broadcast %cst_56 : f32 to vector<4x64xf32>
    %142 = arith.addf %140, %141 : vector<4x64xf32>
    %cst_57 = arith.constant 5.000000e-01 : f32
    %143 = vector.broadcast %cst_57 : f32 to vector<4x64xf32>
    %144 = arith.mulf %143, %142 : vector<4x64xf32>
    %145 = vector.extract_strided_slice %134 {offsets = [0, 128], sizes = [4, 64], strides = [1, 1]} : vector<4x256xf32> to vector<4x64xf32>
    %146 = vector.extract_strided_slice %134 {offsets = [0, 192], sizes = [4, 64], strides = [1, 1]} : vector<4x256xf32> to vector<4x64xf32>
    %cst_58 = arith.constant 1.000000e+00 : f32
    %147 = vector.broadcast %cst_58 : f32 to vector<4x64xf32>
    %148 = arith.addf %146, %147 : vector<4x64xf32>
    %cst_59 = arith.constant 5.000000e-01 : f32
    %149 = vector.broadcast %cst_59 : f32 to vector<4x64xf32>
    %150 = arith.mulf %149, %148 : vector<4x64xf32>
    %151 = arith.mulf %144, %95 : vector<4x64xf32>
    %152 = arith.mulf %139, %145 : vector<4x64xf32>
    %153 = arith.addf %151, %152 : vector<4x64xf32>
    %154 = math.tanh %153 : vector<4x64xf32>
    %155 = arith.mulf %150, %154 : vector<4x64xf32>
    %c3_i32 = arith.constant 3 : i32
    %156 = arith.truncf %155 : vector<4x64xf32> to vector<4x64xbf16>
    %cst_60 = arith.constant dense<0.000000e+00> : vector<4x384xf32>
    %157 = tpu.matmul %156, %9, %cst_60 {dimension_numbers = #tpu.dot_dimension_numbers<[1], [0], [0], [1], [0, 0, 1, 1], [], []>} : vector<4x64xbf16>, vector<64x384xbf16>, vector<4x384xf32> -> vector<4x384xf32>
    %158 = vector.extract_strided_slice %157 {offsets = [0, 256], sizes = [4, 128], strides = [1, 1]} : vector<4x384xf32> to vector<4x128xf32>
    %159 = vector.shape_cast %12 : vector<128xf32> to vector<1x128xf32>
    %160 = vector.broadcast %159 : vector<1x128xf32> to vector<4x128xf32>
    %161 = arith.addf %158, %160 : vector<4x128xf32>
    %162 = arith.truncf %128 : vector<4x32xf32> to vector<4x32xbf16>
    %cst_61 = arith.constant dense<0.000000e+00> : vector<4x128xf32>
    %163 = tpu.matmul %162, %10, %cst_61 {dimension_numbers = #tpu.dot_dimension_numbers<[1], [0], [0], [1], [0, 0, 1, 1], [], []>} : vector<4x32xbf16>, vector<32x128xbf16>, vector<4x128xf32> -> vector<4x128xf32>
    %164 = arith.addf %161, %163 : vector<4x128xf32>
    %165 = math.tanh %164 : vector<4x128xf32>
    %166 = vector.extract_strided_slice %165 {offsets = [0, 0], sizes = [4, 32], strides = [1, 1]} : vector<4x128xf32> to vector<4x32xf32>
    %cst_62 = arith.constant 1.000000e+00 : f32
    %167 = vector.broadcast %cst_62 : f32 to vector<4x32xf32>
    %168 = arith.addf %166, %167 : vector<4x32xf32>
    %cst_63 = arith.constant 5.000000e-01 : f32
    %169 = vector.broadcast %cst_63 : f32 to vector<4x32xf32>
    %170 = arith.mulf %169, %168 : vector<4x32xf32>
    %171 = vector.extract_strided_slice %165 {offsets = [0, 32], sizes = [4, 32], strides = [1, 1]} : vector<4x128xf32> to vector<4x32xf32>
    %cst_64 = arith.constant 1.000000e+00 : f32
    %172 = vector.broadcast %cst_64 : f32 to vector<4x32xf32>
    %173 = arith.addf %171, %172 : vector<4x32xf32>
    %cst_65 = arith.constant 5.000000e-01 : f32
    %174 = vector.broadcast %cst_65 : f32 to vector<4x32xf32>
    %175 = arith.mulf %174, %173 : vector<4x32xf32>
    %176 = vector.extract_strided_slice %165 {offsets = [0, 64], sizes = [4, 32], strides = [1, 1]} : vector<4x128xf32> to vector<4x32xf32>
    %177 = vector.extract_strided_slice %165 {offsets = [0, 96], sizes = [4, 32], strides = [1, 1]} : vector<4x128xf32> to vector<4x32xf32>
    %cst_66 = arith.constant 1.000000e+00 : f32
    %178 = vector.broadcast %cst_66 : f32 to vector<4x32xf32>
    %179 = arith.addf %177, %178 : vector<4x32xf32>
    %cst_67 = arith.constant 5.000000e-01 : f32
    %180 = vector.broadcast %cst_67 : f32 to vector<4x32xf32>
    %181 = arith.mulf %180, %179 : vector<4x32xf32>
    %182 = arith.mulf %175, %126 : vector<4x32xf32>
    %183 = arith.mulf %170, %176 : vector<4x32xf32>
    %184 = arith.addf %182, %183 : vector<4x32xf32>
    %185 = math.tanh %184 : vector<4x32xf32>
    %186 = arith.mulf %181, %185 : vector<4x32xf32>
    %187 = arith.index_cast %c3_i32 : i32 to index
    %c0_68 = arith.constant 0 : index
    %c0_69 = arith.constant 0 : index
    %188 = vector.load %arg11[%187, %c0_68, %c0_69] : memref<8x4x256xf32, #tpu.memory_space<vmem>>, vector<1x4x256xf32>
    %189 = vector.shape_cast %188 : vector<1x4x256xf32> to vector<4x256xf32>
    %190 = vector.extract_strided_slice %157 {offsets = [0, 0], sizes = [4, 256], strides = [1, 1]} : vector<4x384xf32> to vector<4x256xf32>
    %191 = arith.addf %189, %190 : vector<4x256xf32>
    %192 = math.tanh %191 : vector<4x256xf32>
    %193 = vector.extract_strided_slice %192 {offsets = [0, 0], sizes = [4, 64], strides = [1, 1]} : vector<4x256xf32> to vector<4x64xf32>
    %cst_70 = arith.constant 1.000000e+00 : f32
    %194 = vector.broadcast %cst_70 : f32 to vector<4x64xf32>
    %195 = arith.addf %193, %194 : vector<4x64xf32>
    %cst_71 = arith.constant 5.000000e-01 : f32
    %196 = vector.broadcast %cst_71 : f32 to vector<4x64xf32>
    %197 = arith.mulf %196, %195 : vector<4x64xf32>
    %198 = vector.extract_strided_slice %192 {offsets = [0, 64], sizes = [4, 64], strides = [1, 1]} : vector<4x256xf32> to vector<4x64xf32>
    %cst_72 = arith.constant 1.000000e+00 : f32
    %199 = vector.broadcast %cst_72 : f32 to vector<4x64xf32>
    %200 = arith.addf %198, %199 : vector<4x64xf32>
    %cst_73 = arith.constant 5.000000e-01 : f32
    %201 = vector.broadcast %cst_73 : f32 to vector<4x64xf32>
    %202 = arith.mulf %201, %200 : vector<4x64xf32>
    %203 = vector.extract_strided_slice %192 {offsets = [0, 128], sizes = [4, 64], strides = [1, 1]} : vector<4x256xf32> to vector<4x64xf32>
    %204 = vector.extract_strided_slice %192 {offsets = [0, 192], sizes = [4, 64], strides = [1, 1]} : vector<4x256xf32> to vector<4x64xf32>
    %cst_74 = arith.constant 1.000000e+00 : f32
    %205 = vector.broadcast %cst_74 : f32 to vector<4x64xf32>
    %206 = arith.addf %204, %205 : vector<4x64xf32>
    %cst_75 = arith.constant 5.000000e-01 : f32
    %207 = vector.broadcast %cst_75 : f32 to vector<4x64xf32>
    %208 = arith.mulf %207, %206 : vector<4x64xf32>
    %209 = arith.mulf %202, %153 : vector<4x64xf32>
    %210 = arith.mulf %197, %203 : vector<4x64xf32>
    %211 = arith.addf %209, %210 : vector<4x64xf32>
    %212 = math.tanh %211 : vector<4x64xf32>
    %213 = arith.mulf %208, %212 : vector<4x64xf32>
    %c4_i32 = arith.constant 4 : i32
    %214 = arith.truncf %213 : vector<4x64xf32> to vector<4x64xbf16>
    %cst_76 = arith.constant dense<0.000000e+00> : vector<4x384xf32>
    %215 = tpu.matmul %214, %9, %cst_76 {dimension_numbers = #tpu.dot_dimension_numbers<[1], [0], [0], [1], [0, 0, 1, 1], [], []>} : vector<4x64xbf16>, vector<64x384xbf16>, vector<4x384xf32> -> vector<4x384xf32>
    %216 = vector.extract_strided_slice %215 {offsets = [0, 256], sizes = [4, 128], strides = [1, 1]} : vector<4x384xf32> to vector<4x128xf32>
    %217 = vector.shape_cast %12 : vector<128xf32> to vector<1x128xf32>
    %218 = vector.broadcast %217 : vector<1x128xf32> to vector<4x128xf32>
    %219 = arith.addf %216, %218 : vector<4x128xf32>
    %220 = arith.truncf %186 : vector<4x32xf32> to vector<4x32xbf16>
    %cst_77 = arith.constant dense<0.000000e+00> : vector<4x128xf32>
    %221 = tpu.matmul %220, %10, %cst_77 {dimension_numbers = #tpu.dot_dimension_numbers<[1], [0], [0], [1], [0, 0, 1, 1], [], []>} : vector<4x32xbf16>, vector<32x128xbf16>, vector<4x128xf32> -> vector<4x128xf32>
    %222 = arith.addf %219, %221 : vector<4x128xf32>
    %223 = math.tanh %222 : vector<4x128xf32>
    %224 = vector.extract_strided_slice %223 {offsets = [0, 0], sizes = [4, 32], strides = [1, 1]} : vector<4x128xf32> to vector<4x32xf32>
    %cst_78 = arith.constant 1.000000e+00 : f32
    %225 = vector.broadcast %cst_78 : f32 to vector<4x32xf32>
    %226 = arith.addf %224, %225 : vector<4x32xf32>
    %cst_79 = arith.constant 5.000000e-01 : f32
    %227 = vector.broadcast %cst_79 : f32 to vector<4x32xf32>
    %228 = arith.mulf %227, %226 : vector<4x32xf32>
    %229 = vector.extract_strided_slice %223 {offsets = [0, 32], sizes = [4, 32], strides = [1, 1]} : vector<4x128xf32> to vector<4x32xf32>
    %cst_80 = arith.constant 1.000000e+00 : f32
    %230 = vector.broadcast %cst_80 : f32 to vector<4x32xf32>
    %231 = arith.addf %229, %230 : vector<4x32xf32>
    %cst_81 = arith.constant 5.000000e-01 : f32
    %232 = vector.broadcast %cst_81 : f32 to vector<4x32xf32>
    %233 = arith.mulf %232, %231 : vector<4x32xf32>
    %234 = vector.extract_strided_slice %223 {offsets = [0, 64], sizes = [4, 32], strides = [1, 1]} : vector<4x128xf32> to vector<4x32xf32>
    %235 = vector.extract_strided_slice %223 {offsets = [0, 96], sizes = [4, 32], strides = [1, 1]} : vector<4x128xf32> to vector<4x32xf32>
    %cst_82 = arith.constant 1.000000e+00 : f32
    %236 = vector.broadcast %cst_82 : f32 to vector<4x32xf32>
    %237 = arith.addf %235, %236 : vector<4x32xf32>
    %cst_83 = arith.constant 5.000000e-01 : f32
    %238 = vector.broadcast %cst_83 : f32 to vector<4x32xf32>
    %239 = arith.mulf %238, %237 : vector<4x32xf32>
    %240 = arith.mulf %233, %184 : vector<4x32xf32>
    %241 = arith.mulf %228, %234 : vector<4x32xf32>
    %242 = arith.addf %240, %241 : vector<4x32xf32>
    %243 = math.tanh %242 : vector<4x32xf32>
    %244 = arith.mulf %239, %243 : vector<4x32xf32>
    %245 = arith.index_cast %c4_i32 : i32 to index
    %c0_84 = arith.constant 0 : index
    %c0_85 = arith.constant 0 : index
    %246 = vector.load %arg11[%245, %c0_84, %c0_85] : memref<8x4x256xf32, #tpu.memory_space<vmem>>, vector<1x4x256xf32>
    %247 = vector.shape_cast %246 : vector<1x4x256xf32> to vector<4x256xf32>
    %248 = vector.extract_strided_slice %215 {offsets = [0, 0], sizes = [4, 256], strides = [1, 1]} : vector<4x384xf32> to vector<4x256xf32>
    %249 = arith.addf %247, %248 : vector<4x256xf32>
    %250 = math.tanh %249 : vector<4x256xf32>
    %251 = vector.extract_strided_slice %250 {offsets = [0, 0], sizes = [4, 64], strides = [1, 1]} : vector<4x256xf32> to vector<4x64xf32>
    %cst_86 = arith.constant 1.000000e+00 : f32
    %252 = vector.broadcast %cst_86 : f32 to vector<4x64xf32>
    %253 = arith.addf %251, %252 : vector<4x64xf32>
    %cst_87 = arith.constant 5.000000e-01 : f32
    %254 = vector.broadcast %cst_87 : f32 to vector<4x64xf32>
    %255 = arith.mulf %254, %253 : vector<4x64xf32>
    %256 = vector.extract_strided_slice %250 {offsets = [0, 64], sizes = [4, 64], strides = [1, 1]} : vector<4x256xf32> to vector<4x64xf32>
    %cst_88 = arith.constant 1.000000e+00 : f32
    %257 = vector.broadcast %cst_88 : f32 to vector<4x64xf32>
    %258 = arith.addf %256, %257 : vector<4x64xf32>
    %cst_89 = arith.constant 5.000000e-01 : f32
    %259 = vector.broadcast %cst_89 : f32 to vector<4x64xf32>
    %260 = arith.mulf %259, %258 : vector<4x64xf32>
    %261 = vector.extract_strided_slice %250 {offsets = [0, 128], sizes = [4, 64], strides = [1, 1]} : vector<4x256xf32> to vector<4x64xf32>
    %262 = vector.extract_strided_slice %250 {offsets = [0, 192], sizes = [4, 64], strides = [1, 1]} : vector<4x256xf32> to vector<4x64xf32>
    %cst_90 = arith.constant 1.000000e+00 : f32
    %263 = vector.broadcast %cst_90 : f32 to vector<4x64xf32>
    %264 = arith.addf %262, %263 : vector<4x64xf32>
    %cst_91 = arith.constant 5.000000e-01 : f32
    %265 = vector.broadcast %cst_91 : f32 to vector<4x64xf32>
    %266 = arith.mulf %265, %264 : vector<4x64xf32>
    %267 = arith.mulf %260, %211 : vector<4x64xf32>
    %268 = arith.mulf %255, %261 : vector<4x64xf32>
    %269 = arith.addf %267, %268 : vector<4x64xf32>
    %270 = math.tanh %269 : vector<4x64xf32>
    %271 = arith.mulf %266, %270 : vector<4x64xf32>
    %c5_i32 = arith.constant 5 : i32
    %272 = arith.truncf %271 : vector<4x64xf32> to vector<4x64xbf16>
    %cst_92 = arith.constant dense<0.000000e+00> : vector<4x384xf32>
    %273 = tpu.matmul %272, %9, %cst_92 {dimension_numbers = #tpu.dot_dimension_numbers<[1], [0], [0], [1], [0, 0, 1, 1], [], []>} : vector<4x64xbf16>, vector<64x384xbf16>, vector<4x384xf32> -> vector<4x384xf32>
    %274 = vector.extract_strided_slice %273 {offsets = [0, 256], sizes = [4, 128], strides = [1, 1]} : vector<4x384xf32> to vector<4x128xf32>
    %275 = vector.shape_cast %12 : vector<128xf32> to vector<1x128xf32>
    %276 = vector.broadcast %275 : vector<1x128xf32> to vector<4x128xf32>
    %277 = arith.addf %274, %276 : vector<4x128xf32>
    %278 = arith.truncf %244 : vector<4x32xf32> to vector<4x32xbf16>
    %cst_93 = arith.constant dense<0.000000e+00> : vector<4x128xf32>
    %279 = tpu.matmul %278, %10, %cst_93 {dimension_numbers = #tpu.dot_dimension_numbers<[1], [0], [0], [1], [0, 0, 1, 1], [], []>} : vector<4x32xbf16>, vector<32x128xbf16>, vector<4x128xf32> -> vector<4x128xf32>
    %280 = arith.addf %277, %279 : vector<4x128xf32>
    %281 = math.tanh %280 : vector<4x128xf32>
    %282 = vector.extract_strided_slice %281 {offsets = [0, 0], sizes = [4, 32], strides = [1, 1]} : vector<4x128xf32> to vector<4x32xf32>
    %cst_94 = arith.constant 1.000000e+00 : f32
    %283 = vector.broadcast %cst_94 : f32 to vector<4x32xf32>
    %284 = arith.addf %282, %283 : vector<4x32xf32>
    %cst_95 = arith.constant 5.000000e-01 : f32
    %285 = vector.broadcast %cst_95 : f32 to vector<4x32xf32>
    %286 = arith.mulf %285, %284 : vector<4x32xf32>
    %287 = vector.extract_strided_slice %281 {offsets = [0, 32], sizes = [4, 32], strides = [1, 1]} : vector<4x128xf32> to vector<4x32xf32>
    %cst_96 = arith.constant 1.000000e+00 : f32
    %288 = vector.broadcast %cst_96 : f32 to vector<4x32xf32>
    %289 = arith.addf %287, %288 : vector<4x32xf32>
    %cst_97 = arith.constant 5.000000e-01 : f32
    %290 = vector.broadcast %cst_97 : f32 to vector<4x32xf32>
    %291 = arith.mulf %290, %289 : vector<4x32xf32>
    %292 = vector.extract_strided_slice %281 {offsets = [0, 64], sizes = [4, 32], strides = [1, 1]} : vector<4x128xf32> to vector<4x32xf32>
    %293 = vector.extract_strided_slice %281 {offsets = [0, 96], sizes = [4, 32], strides = [1, 1]} : vector<4x128xf32> to vector<4x32xf32>
    %cst_98 = arith.constant 1.000000e+00 : f32
    %294 = vector.broadcast %cst_98 : f32 to vector<4x32xf32>
    %295 = arith.addf %293, %294 : vector<4x32xf32>
    %cst_99 = arith.constant 5.000000e-01 : f32
    %296 = vector.broadcast %cst_99 : f32 to vector<4x32xf32>
    %297 = arith.mulf %296, %295 : vector<4x32xf32>
    %298 = arith.mulf %291, %242 : vector<4x32xf32>
    %299 = arith.mulf %286, %292 : vector<4x32xf32>
    %300 = arith.addf %298, %299 : vector<4x32xf32>
    %301 = math.tanh %300 : vector<4x32xf32>
    %302 = arith.mulf %297, %301 : vector<4x32xf32>
    %303 = arith.index_cast %c5_i32 : i32 to index
    %c0_100 = arith.constant 0 : index
    %c0_101 = arith.constant 0 : index
    %304 = vector.load %arg11[%303, %c0_100, %c0_101] : memref<8x4x256xf32, #tpu.memory_space<vmem>>, vector<1x4x256xf32>
    %305 = vector.shape_cast %304 : vector<1x4x256xf32> to vector<4x256xf32>
    %306 = vector.extract_strided_slice %273 {offsets = [0, 0], sizes = [4, 256], strides = [1, 1]} : vector<4x384xf32> to vector<4x256xf32>
    %307 = arith.addf %305, %306 : vector<4x256xf32>
    %308 = math.tanh %307 : vector<4x256xf32>
    %309 = vector.extract_strided_slice %308 {offsets = [0, 0], sizes = [4, 64], strides = [1, 1]} : vector<4x256xf32> to vector<4x64xf32>
    %cst_102 = arith.constant 1.000000e+00 : f32
    %310 = vector.broadcast %cst_102 : f32 to vector<4x64xf32>
    %311 = arith.addf %309, %310 : vector<4x64xf32>
    %cst_103 = arith.constant 5.000000e-01 : f32
    %312 = vector.broadcast %cst_103 : f32 to vector<4x64xf32>
    %313 = arith.mulf %312, %311 : vector<4x64xf32>
    %314 = vector.extract_strided_slice %308 {offsets = [0, 64], sizes = [4, 64], strides = [1, 1]} : vector<4x256xf32> to vector<4x64xf32>
    %cst_104 = arith.constant 1.000000e+00 : f32
    %315 = vector.broadcast %cst_104 : f32 to vector<4x64xf32>
    %316 = arith.addf %314, %315 : vector<4x64xf32>
    %cst_105 = arith.constant 5.000000e-01 : f32
    %317 = vector.broadcast %cst_105 : f32 to vector<4x64xf32>
    %318 = arith.mulf %317, %316 : vector<4x64xf32>
    %319 = vector.extract_strided_slice %308 {offsets = [0, 128], sizes = [4, 64], strides = [1, 1]} : vector<4x256xf32> to vector<4x64xf32>
    %320 = vector.extract_strided_slice %308 {offsets = [0, 192], sizes = [4, 64], strides = [1, 1]} : vector<4x256xf32> to vector<4x64xf32>
    %cst_106 = arith.constant 1.000000e+00 : f32
    %321 = vector.broadcast %cst_106 : f32 to vector<4x64xf32>
    %322 = arith.addf %320, %321 : vector<4x64xf32>
    %cst_107 = arith.constant 5.000000e-01 : f32
    %323 = vector.broadcast %cst_107 : f32 to vector<4x64xf32>
    %324 = arith.mulf %323, %322 : vector<4x64xf32>
    %325 = arith.mulf %318, %269 : vector<4x64xf32>
    %326 = arith.mulf %313, %319 : vector<4x64xf32>
    %327 = arith.addf %325, %326 : vector<4x64xf32>
    %328 = math.tanh %327 : vector<4x64xf32>
    %329 = arith.mulf %324, %328 : vector<4x64xf32>
    %c6_i32 = arith.constant 6 : i32
    %330 = arith.truncf %329 : vector<4x64xf32> to vector<4x64xbf16>
    %cst_108 = arith.constant dense<0.000000e+00> : vector<4x384xf32>
    %331 = tpu.matmul %330, %9, %cst_108 {dimension_numbers = #tpu.dot_dimension_numbers<[1], [0], [0], [1], [0, 0, 1, 1], [], []>} : vector<4x64xbf16>, vector<64x384xbf16>, vector<4x384xf32> -> vector<4x384xf32>
    %332 = vector.extract_strided_slice %331 {offsets = [0, 256], sizes = [4, 128], strides = [1, 1]} : vector<4x384xf32> to vector<4x128xf32>
    %333 = vector.shape_cast %12 : vector<128xf32> to vector<1x128xf32>
    %334 = vector.broadcast %333 : vector<1x128xf32> to vector<4x128xf32>
    %335 = arith.addf %332, %334 : vector<4x128xf32>
    %336 = arith.truncf %302 : vector<4x32xf32> to vector<4x32xbf16>
    %cst_109 = arith.constant dense<0.000000e+00> : vector<4x128xf32>
    %337 = tpu.matmul %336, %10, %cst_109 {dimension_numbers = #tpu.dot_dimension_numbers<[1], [0], [0], [1], [0, 0, 1, 1], [], []>} : vector<4x32xbf16>, vector<32x128xbf16>, vector<4x128xf32> -> vector<4x128xf32>
    %338 = arith.addf %335, %337 : vector<4x128xf32>
    %339 = math.tanh %338 : vector<4x128xf32>
    %340 = vector.extract_strided_slice %339 {offsets = [0, 0], sizes = [4, 32], strides = [1, 1]} : vector<4x128xf32> to vector<4x32xf32>
    %cst_110 = arith.constant 1.000000e+00 : f32
    %341 = vector.broadcast %cst_110 : f32 to vector<4x32xf32>
    %342 = arith.addf %340, %341 : vector<4x32xf32>
    %cst_111 = arith.constant 5.000000e-01 : f32
    %343 = vector.broadcast %cst_111 : f32 to vector<4x32xf32>
    %344 = arith.mulf %343, %342 : vector<4x32xf32>
    %345 = vector.extract_strided_slice %339 {offsets = [0, 32], sizes = [4, 32], strides = [1, 1]} : vector<4x128xf32> to vector<4x32xf32>
    %cst_112 = arith.constant 1.000000e+00 : f32
    %346 = vector.broadcast %cst_112 : f32 to vector<4x32xf32>
    %347 = arith.addf %345, %346 : vector<4x32xf32>
    %cst_113 = arith.constant 5.000000e-01 : f32
    %348 = vector.broadcast %cst_113 : f32 to vector<4x32xf32>
    %349 = arith.mulf %348, %347 : vector<4x32xf32>
    %350 = vector.extract_strided_slice %339 {offsets = [0, 64], sizes = [4, 32], strides = [1, 1]} : vector<4x128xf32> to vector<4x32xf32>
    %351 = vector.extract_strided_slice %339 {offsets = [0, 96], sizes = [4, 32], strides = [1, 1]} : vector<4x128xf32> to vector<4x32xf32>
    %cst_114 = arith.constant 1.000000e+00 : f32
    %352 = vector.broadcast %cst_114 : f32 to vector<4x32xf32>
    %353 = arith.addf %351, %352 : vector<4x32xf32>
    %cst_115 = arith.constant 5.000000e-01 : f32
    %354 = vector.broadcast %cst_115 : f32 to vector<4x32xf32>
    %355 = arith.mulf %354, %353 : vector<4x32xf32>
    %356 = arith.mulf %349, %300 : vector<4x32xf32>
    %357 = arith.mulf %344, %350 : vector<4x32xf32>
    %358 = arith.addf %356, %357 : vector<4x32xf32>
    %359 = math.tanh %358 : vector<4x32xf32>
    %360 = arith.mulf %355, %359 : vector<4x32xf32>
    %361 = arith.index_cast %c6_i32 : i32 to index
    %c0_116 = arith.constant 0 : index
    %c0_117 = arith.constant 0 : index
    %362 = vector.load %arg11[%361, %c0_116, %c0_117] : memref<8x4x256xf32, #tpu.memory_space<vmem>>, vector<1x4x256xf32>
    %363 = vector.shape_cast %362 : vector<1x4x256xf32> to vector<4x256xf32>
    %364 = vector.extract_strided_slice %331 {offsets = [0, 0], sizes = [4, 256], strides = [1, 1]} : vector<4x384xf32> to vector<4x256xf32>
    %365 = arith.addf %363, %364 : vector<4x256xf32>
    %366 = math.tanh %365 : vector<4x256xf32>
    %367 = vector.extract_strided_slice %366 {offsets = [0, 0], sizes = [4, 64], strides = [1, 1]} : vector<4x256xf32> to vector<4x64xf32>
    %cst_118 = arith.constant 1.000000e+00 : f32
    %368 = vector.broadcast %cst_118 : f32 to vector<4x64xf32>
    %369 = arith.addf %367, %368 : vector<4x64xf32>
    %cst_119 = arith.constant 5.000000e-01 : f32
    %370 = vector.broadcast %cst_119 : f32 to vector<4x64xf32>
    %371 = arith.mulf %370, %369 : vector<4x64xf32>
    %372 = vector.extract_strided_slice %366 {offsets = [0, 64], sizes = [4, 64], strides = [1, 1]} : vector<4x256xf32> to vector<4x64xf32>
    %cst_120 = arith.constant 1.000000e+00 : f32
    %373 = vector.broadcast %cst_120 : f32 to vector<4x64xf32>
    %374 = arith.addf %372, %373 : vector<4x64xf32>
    %cst_121 = arith.constant 5.000000e-01 : f32
    %375 = vector.broadcast %cst_121 : f32 to vector<4x64xf32>
    %376 = arith.mulf %375, %374 : vector<4x64xf32>
    %377 = vector.extract_strided_slice %366 {offsets = [0, 128], sizes = [4, 64], strides = [1, 1]} : vector<4x256xf32> to vector<4x64xf32>
    %378 = vector.extract_strided_slice %366 {offsets = [0, 192], sizes = [4, 64], strides = [1, 1]} : vector<4x256xf32> to vector<4x64xf32>
    %cst_122 = arith.constant 1.000000e+00 : f32
    %379 = vector.broadcast %cst_122 : f32 to vector<4x64xf32>
    %380 = arith.addf %378, %379 : vector<4x64xf32>
    %cst_123 = arith.constant 5.000000e-01 : f32
    %381 = vector.broadcast %cst_123 : f32 to vector<4x64xf32>
    %382 = arith.mulf %381, %380 : vector<4x64xf32>
    %383 = arith.mulf %376, %327 : vector<4x64xf32>
    %384 = arith.mulf %371, %377 : vector<4x64xf32>
    %385 = arith.addf %383, %384 : vector<4x64xf32>
    %386 = math.tanh %385 : vector<4x64xf32>
    %387 = arith.mulf %382, %386 : vector<4x64xf32>
    %c7_i32 = arith.constant 7 : i32
    %388 = arith.truncf %387 : vector<4x64xf32> to vector<4x64xbf16>
    %cst_124 = arith.constant dense<0.000000e+00> : vector<4x384xf32>
    %389 = tpu.matmul %388, %9, %cst_124 {dimension_numbers = #tpu.dot_dimension_numbers<[1], [0], [0], [1], [0, 0, 1, 1], [], []>} : vector<4x64xbf16>, vector<64x384xbf16>, vector<4x384xf32> -> vector<4x384xf32>
    %390 = vector.extract_strided_slice %389 {offsets = [0, 256], sizes = [4, 128], strides = [1, 1]} : vector<4x384xf32> to vector<4x128xf32>
    %391 = vector.shape_cast %12 : vector<128xf32> to vector<1x128xf32>
    %392 = vector.broadcast %391 : vector<1x128xf32> to vector<4x128xf32>
    %393 = arith.addf %390, %392 : vector<4x128xf32>
    %394 = arith.truncf %360 : vector<4x32xf32> to vector<4x32xbf16>
    %cst_125 = arith.constant dense<0.000000e+00> : vector<4x128xf32>
    %395 = tpu.matmul %394, %10, %cst_125 {dimension_numbers = #tpu.dot_dimension_numbers<[1], [0], [0], [1], [0, 0, 1, 1], [], []>} : vector<4x32xbf16>, vector<32x128xbf16>, vector<4x128xf32> -> vector<4x128xf32>
    %396 = arith.addf %393, %395 : vector<4x128xf32>
    %397 = math.tanh %396 : vector<4x128xf32>
    %398 = vector.extract_strided_slice %397 {offsets = [0, 0], sizes = [4, 32], strides = [1, 1]} : vector<4x128xf32> to vector<4x32xf32>
    %cst_126 = arith.constant 1.000000e+00 : f32
    %399 = vector.broadcast %cst_126 : f32 to vector<4x32xf32>
    %400 = arith.addf %398, %399 : vector<4x32xf32>
    %cst_127 = arith.constant 5.000000e-01 : f32
    %401 = vector.broadcast %cst_127 : f32 to vector<4x32xf32>
    %402 = arith.mulf %401, %400 : vector<4x32xf32>
    %403 = vector.extract_strided_slice %397 {offsets = [0, 32], sizes = [4, 32], strides = [1, 1]} : vector<4x128xf32> to vector<4x32xf32>
    %cst_128 = arith.constant 1.000000e+00 : f32
    %404 = vector.broadcast %cst_128 : f32 to vector<4x32xf32>
    %405 = arith.addf %403, %404 : vector<4x32xf32>
    %cst_129 = arith.constant 5.000000e-01 : f32
    %406 = vector.broadcast %cst_129 : f32 to vector<4x32xf32>
    %407 = arith.mulf %406, %405 : vector<4x32xf32>
    %408 = vector.extract_strided_slice %397 {offsets = [0, 64], sizes = [4, 32], strides = [1, 1]} : vector<4x128xf32> to vector<4x32xf32>
    %409 = vector.extract_strided_slice %397 {offsets = [0, 96], sizes = [4, 32], strides = [1, 1]} : vector<4x128xf32> to vector<4x32xf32>
    %cst_130 = arith.constant 1.000000e+00 : f32
    %410 = vector.broadcast %cst_130 : f32 to vector<4x32xf32>
    %411 = arith.addf %409, %410 : vector<4x32xf32>
    %cst_131 = arith.constant 5.000000e-01 : f32
    %412 = vector.broadcast %cst_131 : f32 to vector<4x32xf32>
    %413 = arith.mulf %412, %411 : vector<4x32xf32>
    %414 = arith.mulf %407, %358 : vector<4x32xf32>
    %415 = arith.mulf %402, %408 : vector<4x32xf32>
    %416 = arith.addf %414, %415 : vector<4x32xf32>
    %417 = math.tanh %416 : vector<4x32xf32>
    %418 = arith.mulf %413, %417 : vector<4x32xf32>
    %419 = arith.index_cast %c7_i32 : i32 to index
    %c0_132 = arith.constant 0 : index
    %c0_133 = arith.constant 0 : index
    %420 = vector.load %arg11[%419, %c0_132, %c0_133] : memref<8x4x256xf32, #tpu.memory_space<vmem>>, vector<1x4x256xf32>
    %421 = vector.shape_cast %420 : vector<1x4x256xf32> to vector<4x256xf32>
    %422 = vector.extract_strided_slice %389 {offsets = [0, 0], sizes = [4, 256], strides = [1, 1]} : vector<4x384xf32> to vector<4x256xf32>
    %423 = arith.addf %421, %422 : vector<4x256xf32>
    %424 = math.tanh %423 : vector<4x256xf32>
    %425 = vector.extract_strided_slice %424 {offsets = [0, 0], sizes = [4, 64], strides = [1, 1]} : vector<4x256xf32> to vector<4x64xf32>
    %cst_134 = arith.constant 1.000000e+00 : f32
    %426 = vector.broadcast %cst_134 : f32 to vector<4x64xf32>
    %427 = arith.addf %425, %426 : vector<4x64xf32>
    %cst_135 = arith.constant 5.000000e-01 : f32
    %428 = vector.broadcast %cst_135 : f32 to vector<4x64xf32>
    %429 = arith.mulf %428, %427 : vector<4x64xf32>
    %430 = vector.extract_strided_slice %424 {offsets = [0, 64], sizes = [4, 64], strides = [1, 1]} : vector<4x256xf32> to vector<4x64xf32>
    %cst_136 = arith.constant 1.000000e+00 : f32
    %431 = vector.broadcast %cst_136 : f32 to vector<4x64xf32>
    %432 = arith.addf %430, %431 : vector<4x64xf32>
    %cst_137 = arith.constant 5.000000e-01 : f32
    %433 = vector.broadcast %cst_137 : f32 to vector<4x64xf32>
    %434 = arith.mulf %433, %432 : vector<4x64xf32>
    %435 = vector.extract_strided_slice %424 {offsets = [0, 128], sizes = [4, 64], strides = [1, 1]} : vector<4x256xf32> to vector<4x64xf32>
    %436 = vector.extract_strided_slice %424 {offsets = [0, 192], sizes = [4, 64], strides = [1, 1]} : vector<4x256xf32> to vector<4x64xf32>
    %cst_138 = arith.constant 1.000000e+00 : f32
    %437 = vector.broadcast %cst_138 : f32 to vector<4x64xf32>
    %438 = arith.addf %436, %437 : vector<4x64xf32>
    %cst_139 = arith.constant 5.000000e-01 : f32
    %439 = vector.broadcast %cst_139 : f32 to vector<4x64xf32>
    %440 = arith.mulf %439, %438 : vector<4x64xf32>
    %441 = arith.mulf %434, %385 : vector<4x64xf32>
    %442 = arith.mulf %429, %435 : vector<4x64xf32>
    %443 = arith.addf %441, %442 : vector<4x64xf32>
    %444 = math.tanh %443 : vector<4x64xf32>
    %445 = arith.mulf %440, %444 : vector<4x64xf32>
    %c7_i32_140 = arith.constant 7 : i32
    %446 = arith.truncf %445 : vector<4x64xf32> to vector<4x64xbf16>
    %447 = vector.extract_strided_slice %9 {offsets = [0, 256], sizes = [64, 128], strides = [1, 1]} : vector<64x384xbf16> to vector<64x128xbf16>
    %cst_141 = arith.constant dense<0.000000e+00> : vector<4x128xf32>
    %448 = tpu.matmul %446, %447, %cst_141 {dimension_numbers = #tpu.dot_dimension_numbers<[1], [0], [0], [1], [0, 0, 1, 1], [], []>} : vector<4x64xbf16>, vector<64x128xbf16>, vector<4x128xf32> -> vector<4x128xf32>
    %449 = arith.truncf %418 : vector<4x32xf32> to vector<4x32xbf16>
    %cst_142 = arith.constant dense<0.000000e+00> : vector<4x128xf32>
    %450 = tpu.matmul %449, %10, %cst_142 {dimension_numbers = #tpu.dot_dimension_numbers<[1], [0], [0], [1], [0, 0, 1, 1], [], []>} : vector<4x32xbf16>, vector<32x128xbf16>, vector<4x128xf32> -> vector<4x128xf32>
    %451 = arith.addf %448, %450 : vector<4x128xf32>
    %452 = vector.shape_cast %12 : vector<128xf32> to vector<1x128xf32>
    %453 = vector.broadcast %452 : vector<1x128xf32> to vector<4x128xf32>
    %454 = arith.addf %451, %453 : vector<4x128xf32>
    %455 = math.tanh %454 : vector<4x128xf32>
    %456 = vector.extract_strided_slice %455 {offsets = [0, 0], sizes = [4, 32], strides = [1, 1]} : vector<4x128xf32> to vector<4x32xf32>
    %cst_143 = arith.constant 1.000000e+00 : f32
    %457 = vector.broadcast %cst_143 : f32 to vector<4x32xf32>
    %458 = arith.addf %456, %457 : vector<4x32xf32>
    %cst_144 = arith.constant 5.000000e-01 : f32
    %459 = vector.broadcast %cst_144 : f32 to vector<4x32xf32>
    %460 = arith.mulf %459, %458 : vector<4x32xf32>
    %461 = vector.extract_strided_slice %455 {offsets = [0, 32], sizes = [4, 32], strides = [1, 1]} : vector<4x128xf32> to vector<4x32xf32>
    %cst_145 = arith.constant 1.000000e+00 : f32
    %462 = vector.broadcast %cst_145 : f32 to vector<4x32xf32>
    %463 = arith.addf %461, %462 : vector<4x32xf32>
    %cst_146 = arith.constant 5.000000e-01 : f32
    %464 = vector.broadcast %cst_146 : f32 to vector<4x32xf32>
    %465 = arith.mulf %464, %463 : vector<4x32xf32>
    %466 = vector.extract_strided_slice %455 {offsets = [0, 64], sizes = [4, 32], strides = [1, 1]} : vector<4x128xf32> to vector<4x32xf32>
    %467 = vector.extract_strided_slice %455 {offsets = [0, 96], sizes = [4, 32], strides = [1, 1]} : vector<4x128xf32> to vector<4x32xf32>
    %cst_147 = arith.constant 1.000000e+00 : f32
    %468 = vector.broadcast %cst_147 : f32 to vector<4x32xf32>
    %469 = arith.addf %467, %468 : vector<4x32xf32>
    %cst_148 = arith.constant 5.000000e-01 : f32
    %470 = vector.broadcast %cst_148 : f32 to vector<4x32xf32>
    %471 = arith.mulf %470, %469 : vector<4x32xf32>
    %472 = arith.mulf %465, %416 : vector<4x32xf32>
    %473 = arith.mulf %460, %466 : vector<4x32xf32>
    %474 = arith.addf %472, %473 : vector<4x32xf32>
    %475 = math.tanh %474 : vector<4x32xf32>
    %476 = arith.mulf %471, %475 : vector<4x32xf32>
    %477 = vector.extract_strided_slice %445 {offsets = [0, 0], sizes = [4, 32], strides = [1, 1]} : vector<4x64xf32> to vector<4x32xf32>
    %478 = arith.addf %476, %477 : vector<4x32xf32>
    %c0_149 = arith.constant 0 : index
    %c0_150 = arith.constant 0 : index
    %479 = vector.load %arg6[%c0_149, %c0_150] : memref<32x96xf32, #tpu.memory_space<vmem>>, vector<32x96xf32>
    %cst_151 = arith.constant dense<0.000000e+00> : vector<4x96xf32>
    %480 = tpu.matmul %478, %479, %cst_151 {dimension_numbers = #tpu.dot_dimension_numbers<[1], [0], [0], [1], [0, 0, 1, 1], [], []>} : vector<4x32xf32>, vector<32x96xf32>, vector<4x96xf32> -> vector<4x96xf32>
    %c1 = arith.constant 1 : index
    %c0_152 = arith.constant 0 : index
    %481 = vector.load %arg5[%c1, %c0_152] : memref<8x128xf32, #tpu.memory_space<vmem>>, vector<1x96xf32>
    %482 = vector.shape_cast %481 : vector<1x96xf32> to vector<96xf32>
    %483 = vector.shape_cast %482 : vector<96xf32> to vector<1x96xf32>
    %484 = vector.broadcast %483 : vector<1x96xf32> to vector<4x96xf32>
    %485 = arith.addf %480, %484 : vector<4x96xf32>
    %486 = vector.extract_strided_slice %485 {offsets = [0, 0], sizes = [4, 32], strides = [1, 1]} : vector<4x96xf32> to vector<4x32xf32>
    %487 = vector.shape_cast %486 : vector<4x32xf32> to vector<4x4x8xf32>
    %488 = tpu.transpose %487, [1, 0, 2] : vector<4x4x8xf32> -> vector<4x4x8xf32>
    %489 = vector.extract_strided_slice %485 {offsets = [0, 32], sizes = [4, 32], strides = [1, 1]} : vector<4x96xf32> to vector<4x32xf32>
    %490 = vector.shape_cast %489 : vector<4x32xf32> to vector<4x4x8xf32>
    %491 = tpu.transpose %490, [1, 0, 2] : vector<4x4x8xf32> -> vector<4x4x8xf32>
    %492 = vector.extract_strided_slice %485 {offsets = [0, 64], sizes = [4, 32], strides = [1, 1]} : vector<4x96xf32> to vector<4x32xf32>
    %493 = vector.shape_cast %492 : vector<4x32xf32> to vector<4x4x8xf32>
    %494 = tpu.transpose %493, [1, 0, 2] : vector<4x4x8xf32> -> vector<4x4x8xf32>
    "tpu.trace_start"() <{level = 10 : i32, message = "hbd,hcd->hbc"}> : () -> ()
    %cst_153 = arith.constant dense<0.000000e+00> : vector<4x4x4xf32>
    %495 = tpu.matmul %488, %491, %cst_153 {dimension_numbers = #tpu.dot_dimension_numbers<[2], [2], [1], [1], [0, 0, 0, 1, 1, 1], [0], [0]>} : vector<4x4x8xf32>, vector<4x4x8xf32>, vector<4x4x4xf32> -> vector<4x4x4xf32>
    "tpu.trace_stop"() : () -> ()
    %cst_154 = arith.constant 0.353553385 : f32
    %496 = vector.broadcast %cst_154 : f32 to vector<4x4x4xf32>
    %497 = arith.mulf %495, %496 : vector<4x4x4xf32>
    %cst_155 = arith.constant dense<0xFF800000> : vector<4x4xf32>
    %498 = vector.multi_reduction <maximumf>, %497, %cst_155 [2] : vector<4x4x4xf32> to vector<4x4xf32>
    %499 = vector.shape_cast %498 : vector<4x4xf32> to vector<4x4x1xf32>
    %500 = vector.broadcast %499 : vector<4x4x1xf32> to vector<4x4x4xf32>
    %501 = arith.subf %497, %500 : vector<4x4x4xf32>
    %502 = math.exp %501 : vector<4x4x4xf32>
    %cst_156 = arith.constant dense<0.000000e+00> : vector<4x4xf32>
    %503 = vector.multi_reduction <add>, %502, %cst_156 [2] : vector<4x4x4xf32> to vector<4x4xf32>
    %504 = vector.shape_cast %503 : vector<4x4xf32> to vector<4x4x1xf32>
    %505 = tpu.reciprocal %504 {approx = true} : vector<4x4x1xf32> -> vector<4x4x1xf32>
    %506 = vector.broadcast %505 : vector<4x4x1xf32> to vector<4x4x4xf32>
    %507 = arith.mulf %502, %506 : vector<4x4x4xf32>
    "tpu.trace_start"() <{level = 10 : i32, message = "hbc,hcd->hbd"}> : () -> ()
    %cst_157 = arith.constant dense<0.000000e+00> : vector<4x4x8xf32>
    %508 = tpu.matmul %507, %494, %cst_157 {dimension_numbers = #tpu.dot_dimension_numbers<[2], [1], [1], [2], [0, 0, 0, 1, 1, 2], [0], [0]>} : vector<4x4x4xf32>, vector<4x4x8xf32>, vector<4x4x8xf32> -> vector<4x4x8xf32>
    "tpu.trace_stop"() : () -> ()
    %509 = tpu.transpose %508, [1, 0, 2] : vector<4x4x8xf32> -> vector<4x4x8xf32>
    %510 = vector.shape_cast %509 : vector<4x4x8xf32> to vector<4x32xf32>
    %c0_158 = arith.constant 0 : index
    %c0_159 = arith.constant 0 : index
    %511 = vector.load %arg7[%c0_158, %c0_159] : memref<32x32xf32, #tpu.memory_space<vmem>>, vector<32x32xf32>
    %cst_160 = arith.constant dense<0.000000e+00> : vector<4x32xf32>
    %512 = tpu.matmul %510, %511, %cst_160 {dimension_numbers = #tpu.dot_dimension_numbers<[1], [0], [0], [1], [0, 0, 1, 1], [], []>} : vector<4x32xf32>, vector<32x32xf32>, vector<4x32xf32> -> vector<4x32xf32>
    %c2 = arith.constant 2 : index
    %c0_161 = arith.constant 0 : index
    %513 = vector.load %arg5[%c2, %c0_161] : memref<8x128xf32, #tpu.memory_space<vmem>>, vector<1x32xf32>
    %514 = vector.shape_cast %513 : vector<1x32xf32> to vector<32xf32>
    %515 = vector.shape_cast %514 : vector<32xf32> to vector<1x32xf32>
    %516 = vector.broadcast %515 : vector<1x32xf32> to vector<4x32xf32>
    %517 = arith.addf %512, %516 : vector<4x32xf32>
    %c0_162 = arith.constant 0 : index
    %c0_163 = arith.constant 0 : index
    %518 = vector.load %arg8[%c0_162, %c0_163] : memref<32x64xf32, #tpu.memory_space<vmem>>, vector<32x64xf32>
    %cst_164 = arith.constant dense<0.000000e+00> : vector<4x64xf32>
    %519 = tpu.matmul %517, %518, %cst_164 {dimension_numbers = #tpu.dot_dimension_numbers<[1], [0], [0], [1], [0, 0, 1, 1], [], []>} : vector<4x32xf32>, vector<32x64xf32>, vector<4x64xf32> -> vector<4x64xf32>
    %c3 = arith.constant 3 : index
    %c0_165 = arith.constant 0 : index
    %520 = vector.load %arg5[%c3, %c0_165] : memref<8x128xf32, #tpu.memory_space<vmem>>, vector<1x64xf32>
    %521 = vector.shape_cast %520 : vector<1x64xf32> to vector<64xf32>
    %522 = vector.shape_cast %521 : vector<64xf32> to vector<1x64xf32>
    %523 = vector.broadcast %522 : vector<1x64xf32> to vector<4x64xf32>
    %524 = arith.addf %519, %523 : vector<4x64xf32>
    %cst_166 = arith.constant 0.000000e+00 : f32
    %525 = vector.broadcast %cst_166 : f32 to vector<4x64xf32>
    %526 = arith.maximumf %524, %525 : vector<4x64xf32>
    %c0_167 = arith.constant 0 : index
    %c0_168 = arith.constant 0 : index
    %527 = vector.load %arg9[%c0_167, %c0_168] : memref<64x32xf32, #tpu.memory_space<vmem>>, vector<64x32xf32>
    %cst_169 = arith.constant dense<0.000000e+00> : vector<4x32xf32>
    %528 = tpu.matmul %526, %527, %cst_169 {dimension_numbers = #tpu.dot_dimension_numbers<[1], [0], [0], [1], [0, 0, 1, 1], [], []>} : vector<4x64xf32>, vector<64x32xf32>, vector<4x32xf32> -> vector<4x32xf32>
    %c4 = arith.constant 4 : index
    %c0_170 = arith.constant 0 : index
    %529 = vector.load %arg5[%c4, %c0_170] : memref<8x128xf32, #tpu.memory_space<vmem>>, vector<1x32xf32>
    %530 = vector.shape_cast %529 : vector<1x32xf32> to vector<32xf32>
    %531 = vector.shape_cast %530 : vector<32xf32> to vector<1x32xf32>
    %532 = vector.broadcast %531 : vector<1x32xf32> to vector<4x32xf32>
    %533 = arith.addf %528, %532 : vector<4x32xf32>
    %cst_171 = arith.constant 0.000000e+00 : f32
    %534 = vector.broadcast %cst_171 : f32 to vector<4x32xf32>
    %535 = arith.maximumf %533, %534 : vector<4x32xf32>
    %c5 = arith.constant 5 : index
    %c0_172 = arith.constant 0 : index
    %536 = vector.load %arg5[%c5, %c0_172] : memref<8x128xf32, #tpu.memory_space<vmem>>, vector<1x32xf32>
    %537 = vector.shape_cast %536 : vector<1x32xf32> to vector<32xf32>
    %538 = vector.shape_cast %537 : vector<32xf32> to vector<1x32xf32>
    %539 = vector.broadcast %538 : vector<1x32xf32> to vector<4x32xf32>
    %540 = arith.mulf %535, %539 : vector<4x32xf32>
    %cst_173 = arith.constant dense<0.000000e+00> : vector<4xf32>
    %541 = vector.multi_reduction <add>, %540, %cst_173 [1] : vector<4x32xf32> to vector<4xf32>
    %542 = vector.shape_cast %541 : vector<4xf32> to vector<4x1xf32>
    %c6 = arith.constant 6 : index
    %c0_174 = arith.constant 0 : index
    %543 = vector.load %arg5[%c6, %c0_174] : memref<8x128xf32, #tpu.memory_space<vmem>>, vector<1x1xf32>
    %544 = vector.shape_cast %543 : vector<1x1xf32> to vector<1xf32>
    %545 = vector.shape_cast %544 : vector<1xf32> to vector<1x1xf32>
    %546 = vector.broadcast %545 : vector<1x1xf32> to vector<4x1xf32>
    %547 = arith.addf %542, %546 : vector<4x1xf32>
    %cst_175 = arith.constant 5.000000e-01 : f32
    %548 = vector.broadcast %cst_175 : f32 to vector<4x1xf32>
    %549 = arith.mulf %548, %547 : vector<4x1xf32>
    %550 = math.tanh %549 : vector<4x1xf32>
    %cst_176 = arith.constant 1.000000e+00 : f32
    %551 = vector.broadcast %cst_176 : f32 to vector<4x1xf32>
    %552 = arith.addf %550, %551 : vector<4x1xf32>
    %cst_177 = arith.constant 5.000000e-01 : f32
    %553 = vector.broadcast %cst_177 : f32 to vector<4x1xf32>
    %554 = arith.mulf %553, %552 : vector<4x1xf32>
    %c0_178 = arith.constant 0 : index
    %c0_179 = arith.constant 0 : index
    %555 = vector.load %arg10[%c0_178, %c0_179] : memref<4x1xf32, #tpu.memory_space<vmem>>, vector<4x1xf32>
    tpu.vector_store %arg10[%c0_178, %c0_179], %554 {strides = array<i32>} : memref<4x1xf32, #tpu.memory_space<vmem>>, vector<4x1xf32>,
    return
  }
}

</mosaic_0001>

<bundles_post_ra>
// kernel: tpu_custom_call.1
= control target key start
LH: loop header
LB: loop body
LE: loop exit
PB: predicated region body
PF: predicated region fallthrough
CT: control target
= control target key end

     0   :  { %15 = vsyncpa [#allocation4], 0  ;;  %s3047_s0 = inlined_call_operand.vmem [shape: f32[8,4,1], index: 0, kind: input, shape index: {}]   ;;  %s3048_s1 = inlined_call_operand.vmem [shape: f32[1,1,256], index: 1, kind: input, shape index: {}]   ;;  %s3049_s2 = inlined_call_operand.hbm [shape: f32[8,1,256], index: 2, kind: input, shape index: {}]   ;;  %s3050_s3 = inlined_call_operand.vmem [shape: bf16[64,384], index: 3, kind: input, shape index: {}]   ;;  %s3051_s4 = inlined_call_operand.hbm [shape: bf16[32,128], index: 4, kind: input, shape index: {}]   ;;  %s3052_s5 = inlined_call_operand.vmem [shape: f32[8,128], index: 5, kind: input, shape index: {}]   ;;  %s3053_s6 = inlined_call_operand.hbm [shape: f32[32,96], index: 6, kind: input, shape index: {}]   ;;  %s3054_s7 = inlined_call_operand.hbm [shape: f32[32,32], index: 7, kind: input, shape index: {}]   ;;  %s3055_s8 = inlined_call_operand.hbm [shape: f32[32,64], index: 8, kind: input, shape index: {}]   ;;  %s3056_s9 = inlined_call_operand.vmem [shape: f32[64,32], index: 9, kind: input, shape index: {}]   ;;  %s3057_s10 = inlined_call_operand.vmem [shape: f32[4,1], index: 10, kind: output, shape index: {}]  }
   0x1   :  { %16 = vsyncpa [#allocation6], 0  ;;  %s41_s15 = sshll.u32 %s3051_s4, 4  ;;  %s42_s15 = int_to_ptr.hbm [resolvable:$true] %s41_s15 }
   0x2   :  { %17 = vsyncpa [#allocation9], 0  ;;  %s2346_s16 = smov [#allocation5]   ;;  %s2347_s18 = smov 64  }
   0x3   :  { %s43_s17 = sshll.u32 %s2346_s16, 4  ;;  %s2348_s19 = smov 4   ;;  %s44_s17 = int_to_ptr.vmem [resolvable:$true] %s43_s17 }
   0x4   :  { %49 = dma.hbm_to_vmem [thread:$0]  %s42_s15, 256, %s44_s17, [#allocation6], %s2347_s18, %s2347_s18, %s2348_s19  }
   0x5   :  { %s69_s22 = sshll.u32 %s3054_s7, 4  ;;  %s2349_s23 = smov [#allocation8]   ;;  %s70_s22 = int_to_ptr.hbm [resolvable:$true] %s69_s22 }
   0x6   :  { %s71_s24 = sshll.u32 %s2349_s23, 4  ;;  %s26_s4 = sshll.u32 %s3049_s2, 4  ;;  %s72_s24 = int_to_ptr.vmem [resolvable:$true] %s71_s24  ;;  %s27_s4 = int_to_ptr.hbm [resolvable:$true] %s26_s4 }
   0x7   :  { %s2350_s27 = smov 128   ;;  %s2351_s28 = smov 8  }
   0x8   :  { %77 = dma.hbm_to_vmem [thread:$0]  %s70_s22, 512, %s72_s24, [#allocation9], %s2350_s27, %s2350_s27, %s2351_s28  }
   0x9   :  { %s2352_s29 = smov [#allocation3]   ;;  %s56_s7 = sshll.u32 %s3053_s6, 4  ;;  %s57_s7 = int_to_ptr.hbm [resolvable:$true] %s56_s7 }
   0xa   :  { %s28_s30 = sshll.u32 %s2352_s29, 4  ;;  %s2353_s13 = smov 32   ;;  %s29_s30 = int_to_ptr.vmem [resolvable:$true] %s28_s30 }
   0xb   :  { %s2354_s14 = smov 2   ;;  %s2355_s2 = smov [#allocation7]  }
   0xc   :  { %34 = dma.hbm_to_vmem [thread:$0]  %s27_s4, 256, %s29_s30, [#allocation4], %s2353_s13, %s2353_s13, %s2354_s14  }
   0xd   :  { %s58_s15 = sshll.u32 %s2355_s2, 4  ;;  %s82_s19 = sshll.u32 %s3055_s8, 4  ;;  %s59_s15 = int_to_ptr.vmem [resolvable:$true] %s58_s15  ;;  %s83_s19 = int_to_ptr.hbm [resolvable:$true] %s82_s19 }
   0xe   :  { %64 = dma.hbm_to_vmem [thread:$0]  %s57_s7, 512, %s59_s15, [#allocation6], %s2350_s27, %s2350_s27, %s2351_s28  }
   0xf   :  { %s2356_s20 = smov [#allocation10]  }
  0x10   :  { %s84_s21 = sshll.u32 %s2356_s20, 4  ;;  %s85_s21 = int_to_ptr.vmem [resolvable:$true] %s84_s21 }
  0x11   :  { %90 = dma.hbm_to_vmem [thread:$0]  %s83_s19, 512, %s85_s21, [#allocation9], %s2350_s27, %s2350_s27, %s2351_s28  }
  0x12   :  { %2340 = dma.done.wait [#allocation4], 256  }
  0x13   :  { %2341 = vsyncadd [#allocation4], 4294967040 }
  0x14   :  { %2342 = dma.done.wait [#allocation6], 768  }
  0x15   :  { %2343 = vsyncadd [#allocation6], 4294966528 }
  0x16   :  { %2344 = dma.done.wait [#allocation9], 1024  }
  0x17   :  { %2345 = vsyncadd [#allocation9], 4294966272  ;;  %v2357_v0 = vmov 0   ;;  %v114_v1 = vld [vmem:[%s3047_s0] sm:$0xf]  ;;  %vm272_vm0 = vcmask 1043456  }
  0x18   :  { %2127 = vset.pattern.permute.xlu0 %v2357_v0  ;;  %2128 = vset.pattern.permute.xlu2 %v2357_v0  ;;  %v122_v2 = vld [vmem:[%s3048_s1] sm:$0x3]  ;;  %v184_v3 = vld [vmem:[#allocation3] sm:$0x3]  ;;  %v2103_v21 = vld [vmem:[%s3050_s3 + $0x50] sm:$0xf0] }
  0x19   :  { %2129 = vset.pattern.permute.xlu1 %v2357_v0  ;;  %125 = vperm.xlu0 %2127, %v114_v1   ;;  %v2452_v4 = vperm.slane %v122_v2, 0  ;;  %v2454_v5 = vperm.slane %v122_v2, 1  ;;  %v201_v6 = vperm.slane %v184_v3, 1  ;;  %v200_v8 = vperm.slane %v184_v3, 0  ;;  %v2026_v20 = vld [vmem:[%s3050_s3 + $0x48] sm:$0xf] }
  0x1a   :  { %v2102_v22 = vld [vmem:[%s3050_s3 + $0x4c] sm:$0xf]  ;;  %v2470_v23 = vor.u32 %v2103_v21, %v2026_v20  ;;  %v2028_v24 = vld [vmem:[%s3050_s3 + $0x54] sm:$0xf0]  ;;  %v2034_v25 = vld [vmem:[%s3050_s3 + $0x50] sm:$0xf] }
  0x1b   :  { %v2104_v26 = vld [vmem:[%s3050_s3 + $0x58] sm:$0xf0]  ;;  %v2481_v27 = vor.u32 %v2102_v22, %v2028_v24  ;;  %v2485_v29 = vld [vmem:[#allocation5 + $0x8] sm:$0xff]  ;;  %v2014_v30 = vld [vmem:[%s3050_s3 + $0x30] sm:$0xf]  ;;  %vm409_vm1 = vcmask 523264  }
  0x1c   :  { %v2483_v28 = vor.u32 %v2104_v26, %v2034_v25  ;;  %v2100_v31 = vld [vmem:[%s3050_s3 + $0x38] sm:$0xf0]  ;;  %417 = vmatpush.bf16.msra.mxu0 %v2470_v23  ;;  %v2099_v33 = vld [vmem:[%s3050_s3 + $0x34] sm:$0xf]  ;;  %v2016_v34 = vld [vmem:[%s3050_s3 + $0x3c] sm:$0xf0]  ;;  %476 = vmatpush.bf16.msra.mxu3 %v2485_v29 }
  0x1d   :  { %v2494_v32 = vor.u32 %v2100_v31, %v2014_v30  ;;  %v2022_v35 = vld [vmem:[%s3050_s3 + $0x38] sm:$0xf]  ;;  %430 = vmatpush.bf16.msra.mxu1 %v2481_v27  ;;  %v2507_v36 = vor.u32 %v2099_v33, %v2016_v34  ;;  %v2101_v37 = vld [vmem:[%s3050_s3 + $0x40] sm:$0xf0]  ;;  %v2096_v42 = vld [vmem:[%s3050_s3 + $0x1c] sm:$0xf] }
  0x1e   :  { %443 = vmatpush.bf16.msra.mxu2 %v2483_v28  ;;  %v2512_v38 = vld [vmem:[#allocation5] sm:$0xff]  ;;  %v2518_v40 = vor.u32 %v2101_v37, %v2022_v35  ;;  %v2097_v41 = vld [vmem:[%s3050_s3 + $0x20] sm:$0xf0]  ;;  %v2004_v43 = vld [vmem:[%s3050_s3 + $0x24] sm:$0xf0]  ;;  %vm466_vm2 = vcmask 261120  }
  0x1f   :  { %v2002_v39 = vld [vmem:[%s3050_s3 + $0x18] sm:$0xf]  ;;  %v2010_v44 = vld [vmem:[%s3050_s3 + $0x20] sm:$0xf]  ;;  %v2098_v45 = vld [vmem:[%s3050_s3 + $0x28] sm:$0xf0]  ;;  %v2540_v47 = vor.u32 %v2096_v42, %v2004_v43 }
  0x20   :  { %418 = vmatpush.bf16.msra.mxu0 %v2494_v32  ;;  %v2536_v46 = vor.u32 %v2097_v41, %v2002_v39  ;;  %v2542_v48 = vor.u32 %v2098_v45, %v2010_v44  ;;  %477 = vmatpush.bf16.msra.mxu3 %v2512_v38  ;;  %v1990_v53 = vld [vmem:[%s3050_s3] sm:$0xf]  ;;  %v2094_v54 = vld [vmem:[%s3050_s3 + $0x8] sm:$0xf0]  ;;  %v2093_v55 = vld [vmem:[%s3050_s3 + $0x4] sm:$0xf] }
  0x21   :  { %431 = vmatpush.bf16.msra.mxu1 %v2507_v36  ;;  %v2565_v56 = vor.u32 %v2094_v54, %v1990_v53  ;;  %v1992_v57 = vld [vmem:[%s3050_s3 + $0xc] sm:$0xf0]  ;;  %v1998_v58 = vld [vmem:[%s3050_s3 + $0x8] sm:$0xf]  ;;  %v2095_v59 = vld [vmem:[%s3050_s3 + $0x10] sm:$0xf0] }
  0x22   :  { %444 = vmatpush.bf16.msra.mxu2 %v2518_v40  ;;  %v2576_v60 = vor.u32 %v2093_v55, %v1992_v57  ;;  %v2578_v61 = vor.u32 %v2095_v59, %v1998_v58  ;;  %v115_v21 = vld [vmem:[%s3047_s0 + $0x4] sm:$0xf]  ;;  %v185_v30 = vld [vmem:[#allocation3 + $0x2] sm:$0x3]  ;;  %s2358_s21 = smov 96   ;;  %s2359_s22 = smov 120  }
  0x23   :  { %478 = vmatmul.bf16.vlgmr.msra.gmra.mxu3 %v2357_v0  ;;  %v202_v31 = vperm.slane %v185_v30, 0  ;;  %v203_v33 = vperm.slane %v185_v30, 1  ;;  %s2360_s23 = smov 104   ;;  %s2361_s1 = smov 112   ;;  %vm1352_vm3 = vcmask 1047556   ;;  %vm1541_vm4 = vcmask 64512  }
  0x24   :  { %545 = vmatpush.bf16.msrb.mxu3 %v2470_v23  ;;  %419 = vmatpush.bf16.msra.mxu0 %v2536_v46  ;;  %vm1650_vm5 = vcmask 27648   ;;  %vm1695_vm6 = vcmask 31744   ;;  %vm1868_vm7 = vcmask 130048   ;;  %vm1870_vm8 = vcmask 195584  }
  0x25   :  { %432 = vmatpush.bf16.msra.mxu1 %v2540_v47  ;;  %vm1968_vm9 = vcmask 257024   ;;  %vm1979_vm10 = vcmask 3072  }
  0x26   :  { %445 = vmatpush.bf16.msra.mxu2 %v2542_v48 }
  0x28   :  { %546 = vmatpush.bf16.msrb.mxu3 %v2494_v32  ;;  %420 = vmatpush.bf16.msra.mxu0 %v2565_v56 }
  0x29   :  { %433 = vmatpush.bf16.msra.mxu1 %v2576_v60 }
  0x2a   :  { %446 = vmatpush.bf16.msra.mxu2 %v2578_v61 }
  0x2c   :  { %547 = vmatpush.bf16.msrb.mxu3 %v2536_v46  ;;  %558 = vmatpush.bf16.msrb.mxu0 %v2481_v27 }
  0x2d   :  { %571 = vmatpush.bf16.msrb.mxu1 %v2483_v28 }
  0x2e   :  { %594 = vmatpush.bf16.msrb.mxu2 %v2485_v29 }
  0x30   :  { %548 = vmatpush.bf16.msrb.mxu3 %v2565_v56  ;;  %559 = vmatpush.bf16.msrb.mxu0 %v2507_v36 }
  0x31   :  { %572 = vmatpush.bf16.msrb.mxu1 %v2518_v40 }
  0x32   :  { %595 = vmatpush.bf16.msrb.mxu2 %v2512_v38 }
  0x34   :  { %663 = vmatpush.bf16.msra.mxu3 %v2470_v23  ;;  %560 = vmatpush.bf16.msrb.mxu0 %v2540_v47 }
  0x35   :  { %573 = vmatpush.bf16.msrb.mxu1 %v2542_v48 }
  0x38   :  { %664 = vmatpush.bf16.msra.mxu3 %v2494_v32  ;;  %561 = vmatpush.bf16.msrb.mxu0 %v2576_v60 }
  0x39   :  { %574 = vmatpush.bf16.msrb.mxu1 %v2578_v61 }
  0x3c   :  { %665 = vmatpush.bf16.msra.mxu3 %v2536_v46 }
  0x40   :  { %666 = vmatpush.bf16.msra.mxu3 %v2565_v56 }
  0x8b   :  { %v126_v7 = vpop.permute.xlu0 %125 }
  0x8c   :  { %v168_v9 = vmul.f32 %v2452_v4, %v126_v7  ;;  %v169_v10 = vmul.f32 %v2454_v5, %v126_v7 }
  0x8e   :  { %v233_v11 = vadd.f32 %v201_v6, %v169_v10  ;;  %v232_v12 = vadd.f32 %v200_v8, %v168_v9 }
  0x90   :  { %v264_v13 = vrot.slane %v233_v11, 4 }
  0x92   :  { %v273_v14 = vsel %vm272_vm0, %v232_v12, %v264_v13  ;;  %v2615_v13 = vld [vmem:[%s3052_s5] ss:$0 sm:$0xff] }
  0x93   :  { %2137 = vtanh.f32 %v273_v14 }
  0x99   :  { %v2138_v15 = vpop.eup %2137 }
  0x9a   :  { %323 = vrot.lane.b32.xlu1 %v2138_v15, %s2347_s18  ;;  %v320_v16 = vadd.f32 1.0, %v2138_v15  ;;  %v330_v18 = vrot.slane %v2138_v15, 4 }
  0x9c   :  { %v321_v17 = vmul.f32 0.5, %v320_v16 }
  0x9e   :  { %v332_v19 = vmul.f32 %v330_v18, %v321_v17  ;;  %v329_v49 = vmul.f32 0.0, %v321_v17 }
  0xa0   :  { %334 = vrot.lane.b32.xlu0 %v332_v19, %s2347_s18 }
  0xa6   :  { %v479_v7 = vpop.f32.mrf.mxu3 }
  0xae   :  { %v481_v8 = vpop.f32.mrf.mxu3 }
 0x10c   :  { %v324_v62 = vpop.permute.xlu1 %323 }
 0x10d   :  { %v325_v63 = vrot.slane %v324_v62, 4 }
 0x10f   :  { %v327_v0 = vadd.f32 1.0, %v325_v63 }
 0x111   :  { %v328_v1 = vmul.f32 0.5, %v327_v0 }
 0x112   :  { %v335_v50 = vpop.permute.xlu0 %334 }
 0x113   :  { %v2552_v51 = vadd.f32 %v335_v50, %v329_v49 }
 0x115   :  { %2139 = vtanh.f32 %v2552_v51 }
 0x11b   :  { %v2140_v52 = vpop.eup %2139 }
 0x11c   :  { %340 = vrot.lane.b32.xlu1 %v2140_v52, %s2347_s18 }
 0x18e   :  { %v341_v2 = vpop.permute.xlu1 %340 }
 0x18f   :  { %v343_v3 = vmul.f32 %v341_v2, %v328_v1 }
 0x191   :  { %v344_v6 = vpack.c.bf16 %v343_v3, %v343_v3 }
 0x193   :  { %2036 = vmatmul.msk.bf16.vlgmr.msra.gmra.mxu0 %vm409_vm1, %v344_v6  ;;  %2037 = vmatmul.msk.bf16.vlgmr.msra.gmra.mxu1 %vm409_vm1, %v344_v6 }
 0x194   :  { %2038 = vmatmul.msk.bf16.vlgmr.msra.gmra.mxu2 %vm409_vm1, %v344_v6  ;;  %676 = vmatpush.bf16.msra.mxu0 %v2481_v27  ;;  %v116_v6 = vld [vmem:[%s3047_s0 + $0x8] sm:$0xf] }
 0x195   :  { %689 = vmatpush.bf16.msra.mxu1 %v2483_v28  ;;  %712 = vmatpush.bf16.msra.mxu2 %v2485_v29 }
 0x198   :  { %677 = vmatpush.bf16.msra.mxu0 %v2507_v36 }
 0x199   :  { %690 = vmatpush.bf16.msra.mxu1 %v2518_v40  ;;  %713 = vmatpush.bf16.msra.mxu2 %v2512_v38 }
 0x19c   :  { %678 = vmatpush.bf16.msra.mxu0 %v2540_v47 }
 0x19d   :  { %691 = vmatpush.bf16.msra.mxu1 %v2542_v48 }
 0x1a0   :  { %679 = vmatpush.bf16.msra.mxu0 %v2576_v60 }
 0x1a1   :  { %692 = vmatpush.bf16.msra.mxu1 %v2578_v61 }
 0x210   :  { %v422_v9 = vpop.f32.mrf.mxu0  ;;  %v435_v10 = vpop.f32.mrf.mxu1 }
 0x211   :  { %v508_v11 = vrot.slane %v435_v10, 4 }
 0x213   :  { %v509_v12 = vsel %vm272_vm0, %v422_v9, %v508_v11 }
 0x217   :  { %v448_v14 = vpop.f32.mrf.mxu2 }
 0x218   :  { %v453_v15 = vadd.f32 %v2615_v13, %v448_v14  ;;  %v424_v16 = vpop.f32.mrf.mxu0  ;;  %v437_v17 = vpop.f32.mrf.mxu1 }
 0x21a   :  { %v483_v18 = vadd.f32 %v479_v7, %v453_v15 }
 0x21c   :  { %2141 = vtanh.f32 %v483_v18 }
 0x21f   :  { %v450_v19 = vpop.f32.mrf.mxu2 }
 0x222   :  { %v2142_v20 = vpop.eup %2141 }
 0x223   :  { %489 = vrot.lane.b32.xlu2 %v2142_v20, %s2347_s18  ;;  %v485_v22 = vadd.f32 1.0, %v2142_v20 }
 0x225   :  { %v486_v24 = vmul.f32 0.5, %v485_v22 }
 0x227   :  { %v487_v54 = vmul.f32 0.0, %v486_v24 }
 0x22b   :  { %130 = vperm.xlu2 %2128, %v115_v21   ;;  %v186_v21 = vld [vmem:[#allocation3 + $0x4] sm:$0x3] }
 0x27d   :  { %v490_v25 = vpop.permute.xlu2 %489 }
 0x27e   :  { %v492_v26 = vmul.f32 %v490_v25, %v486_v24 }
 0x280   :  { %494 = vrot.lane.b32.xlu0 %v492_v26, %s2353_s13  ;;  %v204_v26 = vperm.slane %v186_v21, 0 }
 0x285   :  { %v131_v34 = vpop.permute.xlu2 %130 }
 0x286   :  { %v170_v35 = vmul.f32 %v2452_v4, %v131_v34  ;;  %v171_v37 = vmul.f32 %v2454_v5, %v131_v34 }
 0x288   :  { %v234_v39 = vadd.f32 %v202_v31, %v170_v35  ;;  %v235_v41 = vadd.f32 %v203_v33, %v171_v37 }
 0x28a   :  { %v265_v42 = vrot.slane %v235_v41, 4 }
 0x28c   :  { %v274_v43 = vsel %vm272_vm0, %v234_v39, %v265_v42 }
 0x28d   :  { %v511_v44 = vadd.f32 %v509_v12, %v274_v43 }
 0x28f   :  { %2143 = vtanh.f32 %v511_v44 }
 0x295   :  { %v2144_v45 = vpop.eup %2143 }
 0x296   :  { %516 = vrot.lane.b32.xlu0 %v2144_v45, %s2347_s18  ;;  %v513_v49 = vadd.f32 1.0, %v2144_v45  ;;  %v523_v52 = vrot.slane %v2144_v45, 4 }
 0x298   :  { %v514_v50 = vmul.f32 0.5, %v513_v49 }
 0x29a   :  { %v525_v53 = vmul.f32 %v523_v52, %v514_v50  ;;  %v522_v59 = vmul.f32 %v514_v50, %v2552_v51 }
 0x29c   :  { %527 = vrot.lane.b32.xlu1 %v525_v53, %s2347_s18 }
 0x2f2   :  { %v495_v55 = vpop.permute.xlu0 %494 }
 0x2f3   :  { %v2628_v57 = vadd.f32 %v495_v55, %v487_v54 }
 0x2f5   :  { %2145 = vtanh.f32 %v2628_v57 }
 0x2fb   :  { %v2146_v58 = vpop.eup %2145 }
 0x2fc   :  { %500 = vrot.lane.b32.xlu2 %v2146_v58, %s2347_s18 }
 0x308   :  { %v517_v7 = vpop.permute.xlu0 %516 }
 0x309   :  { %v518_v51 = vrot.slane %v517_v7, 4  ;;  %v117_v7 = vld [vmem:[%s3047_s0 + $0xc] sm:$0xf] }
 0x30b   :  { %v520_v8 = vadd.f32 1.0, %v518_v51 }
 0x30d   :  { %v521_v9 = vmul.f32 0.5, %v520_v8 }
 0x30e   :  { %v528_v62 = vpop.permute.xlu1 %527 }
 0x30f   :  { %v2633_v63 = vadd.f32 %v528_v62, %v522_v59 }
 0x311   :  { %2147 = vtanh.f32 %v2633_v63 }
 0x317   :  { %v2148_v0 = vpop.eup %2147 }
 0x318   :  { %533 = vrot.lane.b32.xlu1 %v2148_v0, %s2347_s18 }
 0x320   :  { %135 = vperm.xlu1 %2129, %v116_v6  }
 0x356   :  { %v501_v1 = vpop.permute.xlu2 %500 }
 0x357   :  { %v503_v2 = vmul.f32 %v501_v1, %v486_v24  ;;  %v205_v24 = vperm.slane %v186_v21, 1 }
 0x359   :  { %v581_v3 = vpack.c.bf16 %v503_v2, %v503_v2 }
 0x35b   :  { %583 = vrot.lane.b32.xlu2 %v581_v3, %s2353_s13 }
 0x38a   :  { %v534_v10 = vpop.permute.xlu1 %533 }
 0x38b   :  { %v536_v11 = vmul.f32 %v534_v10, %v521_v9 }
 0x38d   :  { %v537_v12 = vpack.c.bf16 %v536_v11, %v536_v11 }
 0x38f   :  { %2047 = vmatmul.msk.bf16.vlgmr.msrb.gmra.mxu3 %vm409_vm1, %v537_v12  ;;  %2048 = vmatmul.msk.bf16.vlgmr.msrb.gmra.mxu0 %vm409_vm1, %v537_v12 }
 0x390   :  { %2049 = vmatmul.msk.bf16.vlgmr.msrb.gmra.mxu1 %vm409_vm1, %v537_v12  ;;  %781 = vmatpush.bf16.msrb.mxu3 %v2470_v23 }
 0x391   :  { %794 = vmatpush.bf16.msrb.mxu0 %v2481_v27  ;;  %807 = vmatpush.bf16.msrb.mxu1 %v2483_v28 }
 0x392   :  { %v136_v22 = vpop.permute.xlu1 %135 }
 0x393   :  { %v173_v25 = vmul.f32 %v2454_v5, %v136_v22  ;;  %v172_v30 = vmul.f32 %v2452_v4, %v136_v22 }
 0x394   :  { %782 = vmatpush.bf16.msrb.mxu3 %v2494_v32 }
 0x395   :  { %795 = vmatpush.bf16.msrb.mxu0 %v2507_v36  ;;  %808 = vmatpush.bf16.msrb.mxu1 %v2518_v40  ;;  %v237_v31 = vadd.f32 %v205_v24, %v173_v25  ;;  %v236_v33 = vadd.f32 %v204_v26, %v172_v30 }
 0x397   :  { %v266_v34 = vrot.slane %v237_v31, 4 }
 0x398   :  { %783 = vmatpush.bf16.msrb.mxu3 %v2536_v46 }
 0x399   :  { %796 = vmatpush.bf16.msrb.mxu0 %v2540_v47  ;;  %809 = vmatpush.bf16.msrb.mxu1 %v2542_v48  ;;  %v275_v37 = vsel %vm272_vm0, %v236_v33, %v266_v34  ;;  %v187_v34 = vld [vmem:[#allocation3 + $0x6] sm:$0x3] }
 0x39c   :  { %784 = vmatpush.bf16.msrb.mxu3 %v2565_v56 }
 0x39d   :  { %797 = vmatpush.bf16.msrb.mxu0 %v2576_v60  ;;  %810 = vmatpush.bf16.msrb.mxu1 %v2578_v61 }
 0x3b5   :  { %v584_v14 = vpop.permute.xlu2 %583 }
 0x3b6   :  { %2050 = vmatmul.msk.bf16.vlgmr.msrb.gmra.mxu2 %vm466_vm2, %v584_v14 }
 0x3b7   :  { %830 = vmatpush.bf16.msrb.mxu2 %v2485_v29 }
 0x3bb   :  { %831 = vmatpush.bf16.msrb.mxu2 %v2512_v38 }
 0x40c   :  { %v563_v15 = vpop.f32.mrf.mxu0 }
 0x40d   :  { %v576_v16 = vpop.f32.mrf.mxu1  ;;  %v626_v35 = vrot.slane %v563_v15, 4 }
 0x40e   :  { %v580_v42 = vadd.f32 %v2615_v13, %v576_v16 }
 0x412   :  { %v550_v17 = vpop.f32.mrf.mxu3 }
 0x413   :  { %v627_v39 = vsel %vm272_vm0, %v550_v17, %v626_v35 }
 0x414   :  { %v565_v18 = vpop.f32.mrf.mxu0  ;;  %v629_v41 = vadd.f32 %v627_v39, %v275_v37  ;;  %v207_v37 = vperm.slane %v187_v34, 1 }
 0x415   :  { %v578_v19 = vpop.f32.mrf.mxu1 }
 0x416   :  { %2149 = vtanh.f32 %v629_v41 }
 0x41a   :  { %v552_v20 = vpop.f32.mrf.mxu3 }
 0x41c   :  { %v2150_v45 = vpop.eup %2149 }
 0x41d   :  { %v631_v50 = vadd.f32 1.0, %v2150_v45  ;;  %v641_v54 = vrot.slane %v2150_v45, 4 }
 0x41f   :  { %v632_v53 = vmul.f32 0.5, %v631_v50 }
 0x421   :  { %v643_v55 = vmul.f32 %v641_v54, %v632_v53  ;;  %v640_v1 = vmul.f32 %v632_v53, %v2633_v63 }
 0x439   :  { %v597_v43 = vpop.f32.mrf.mxu2 }
 0x43a   :  { %v601_v44 = vadd.f32 %v597_v43, %v580_v42  ;;  %v206_v42 = vperm.slane %v187_v34, 0 }
 0x43c   :  { %2151 = vtanh.f32 %v601_v44 }
 0x441   :  { %v599_v49 = vpop.f32.mrf.mxu2 }
 0x442   :  { %v2152_v52 = vpop.eup %2151 }
 0x443   :  { %607 = vrot.lane.b32.xlu0 %v2152_v52, %s2347_s18  ;;  %v603_v58 = vadd.f32 1.0, %v2152_v52 }
 0x445   :  { %v604_v59 = vmul.f32 0.5, %v603_v58 }
 0x447   :  { %v605_v51 = vmul.f32 %v604_v59, %v2628_v57 }
 0x44b   :  { %645 = vrot.lane.b32.xlu0 %v643_v55, %s2347_s18 }
 0x4b5   :  { %v608_v62 = vpop.permute.xlu0 %607 }
 0x4b6   :  { %v610_v0 = vmul.f32 %v608_v62, %v604_v59 }
 0x4b8   :  { %612 = vrot.lane.b32.xlu2 %v610_v0, %s2353_s13 }
 0x4bd   :  { %v646_v2 = vpop.permute.xlu0 %645 }
 0x4be   :  { %v2668_v3 = vadd.f32 %v646_v2, %v640_v1 }
 0x4c0   :  { %2153 = vtanh.f32 %v2668_v3  ;;  %634 = vrot.lane.b32.xlu2 %v2150_v45, %s2347_s18 }
 0x4c6   :  { %v2154_v6 = vpop.eup %2153 }
 0x4c7   :  { %651 = vrot.lane.b32.xlu0 %v2154_v6, %s2347_s18 }
 0x4cf   :  { %140 = vperm.xlu0 %2127, %v117_v7  }
 0x512   :  { %v613_v8 = vpop.permute.xlu2 %612 }
 0x513   :  { %v2677_v9 = vadd.f32 %v613_v8, %v605_v51 }
 0x515   :  { %2155 = vtanh.f32 %v2677_v9 }
 0x51a   :  { %v635_v10 = vpop.permute.xlu2 %634 }
 0x51b   :  { %v2156_v63 = vpop.eup %2155  ;;  %v636_v11 = vrot.slane %v635_v10, 4 }
 0x51c   :  { %618 = vrot.lane.b32.xlu1 %v2156_v63, %s2347_s18 }
 0x51d   :  { %v638_v12 = vadd.f32 1.0, %v636_v11 }
 0x51f   :  { %v639_v14 = vmul.f32 0.5, %v638_v12 }
 0x539   :  { %v652_v15 = vpop.permute.xlu0 %651 }
 0x53a   :  { %v654_v16 = vmul.f32 %v652_v15, %v639_v14  ;;  %v118_v14 = vld [vmem:[%s3047_s0 + $0x10] sm:$0xf] }
 0x53c   :  { %v655_v17 = vpack.c.bf16 %v654_v16, %v654_v16 }
 0x53e   :  { %2051 = vmatmul.msk.bf16.vlgmr.msra.gmra.mxu3 %vm409_vm1, %v655_v17  ;;  %2052 = vmatmul.msk.bf16.vlgmr.msra.gmra.mxu0 %vm409_vm1, %v655_v17 }
 0x53f   :  { %2053 = vmatmul.msk.bf16.vlgmr.msra.gmra.mxu1 %vm409_vm1, %v655_v17  ;;  %899 = vmatpush.bf16.msra.mxu3 %v2470_v23 }
 0x540   :  { %912 = vmatpush.bf16.msra.mxu0 %v2481_v27  ;;  %925 = vmatpush.bf16.msra.mxu1 %v2483_v28 }
 0x541   :  { %v141_v35 = vpop.permute.xlu0 %140 }
 0x542   :  { %v175_v39 = vmul.f32 %v2454_v5, %v141_v35  ;;  %v174_v43 = vmul.f32 %v2452_v4, %v141_v35 }
 0x543   :  { %900 = vmatpush.bf16.msra.mxu3 %v2494_v32 }
 0x544   :  { %913 = vmatpush.bf16.msra.mxu0 %v2507_v36  ;;  %926 = vmatpush.bf16.msra.mxu1 %v2518_v40  ;;  %v239_v41 = vadd.f32 %v207_v37, %v175_v39  ;;  %v238_v45 = vadd.f32 %v206_v42, %v174_v43  ;;  %v188_v43 = vld [vmem:[#allocation3 + $0x8] sm:$0x3] }
 0x546   :  { %v267_v44 = vrot.slane %v239_v41, 4 }
 0x547   :  { %901 = vmatpush.bf16.msra.mxu3 %v2536_v46 }
 0x548   :  { %914 = vmatpush.bf16.msra.mxu0 %v2540_v47  ;;  %927 = vmatpush.bf16.msra.mxu1 %v2542_v48  ;;  %v276_v49 = vsel %vm272_vm0, %v238_v45, %v267_v44  ;;  %v209_v45 = vperm.slane %v188_v43, 1 }
 0x54b   :  { %902 = vmatpush.bf16.msra.mxu3 %v2565_v56 }
 0x54c   :  { %915 = vmatpush.bf16.msra.mxu0 %v2576_v60  ;;  %928 = vmatpush.bf16.msra.mxu1 %v2578_v61 }
 0x58e   :  { %v619_v57 = vpop.permute.xlu1 %618 }
 0x58f   :  { %v621_v18 = vmul.f32 %v619_v57, %v604_v59 }
 0x591   :  { %v699_v19 = vpack.c.bf16 %v621_v18, %v621_v18 }
 0x593   :  { %701 = vrot.lane.b32.xlu1 %v699_v19, %s2353_s13 }
 0x5bb   :  { %v681_v20 = vpop.f32.mrf.mxu0 }
 0x5bc   :  { %v694_v21 = vpop.f32.mrf.mxu1  ;;  %v744_v22 = vrot.slane %v681_v20, 4 }
 0x5bd   :  { %v698_v52 = vadd.f32 %v2615_v13, %v694_v21 }
 0x5c1   :  { %v668_v24 = vpop.f32.mrf.mxu3 }
 0x5c2   :  { %v745_v25 = vsel %vm272_vm0, %v668_v24, %v744_v22 }
 0x5c3   :  { %v683_v26 = vpop.f32.mrf.mxu0  ;;  %v747_v50 = vadd.f32 %v745_v25, %v276_v49 }
 0x5c4   :  { %v696_v30 = vpop.f32.mrf.mxu1 }
 0x5c5   :  { %2157 = vtanh.f32 %v747_v50 }
 0x5c9   :  { %v670_v31 = vpop.f32.mrf.mxu3 }
 0x5cb   :  { %v2158_v55 = vpop.eup %2157 }
 0x5cc   :  { %v749_v59 = vadd.f32 1.0, %v2158_v55  ;;  %v759_v1 = vrot.slane %v2158_v55, 4 }
 0x5ce   :  { %v750_v0 = vmul.f32 0.5, %v749_v59 }
 0x5d0   :  { %v761_v2 = vmul.f32 %v759_v1, %v750_v0  ;;  %v758_v63 = vmul.f32 %v750_v0, %v2668_v3 }
 0x605   :  { %v702_v33 = vpop.permute.xlu1 %701 }
 0x606   :  { %2054 = vmatmul.msk.bf16.vlgmr.msra.gmra.mxu2 %vm466_vm2, %v702_v33 }
 0x607   :  { %948 = vmatpush.bf16.msra.mxu2 %v2485_v29 }
 0x60b   :  { %949 = vmatpush.bf16.msra.mxu2 %v2512_v38 }
 0x689   :  { %v715_v53 = vpop.f32.mrf.mxu2 }
 0x68a   :  { %v719_v54 = vadd.f32 %v715_v53, %v698_v52  ;;  %v208_v52 = vperm.slane %v188_v43, 0 }
 0x68c   :  { %2159 = vtanh.f32 %v719_v54 }
 0x691   :  { %v717_v58 = vpop.f32.mrf.mxu2 }
 0x692   :  { %v2160_v62 = vpop.eup %2159 }
 0x693   :  { %725 = vrot.lane.b32.xlu2 %v2160_v62, %s2347_s18  ;;  %v721_v6 = vadd.f32 1.0, %v2160_v62 }
 0x695   :  { %v722_v7 = vmul.f32 0.5, %v721_v6 }
 0x697   :  { %v723_v15 = vmul.f32 %v722_v7, %v2677_v9 }
 0x69b   :  { %763 = vrot.lane.b32.xlu2 %v761_v2, %s2347_s18 }
 0x6ed   :  { %v726_v51 = vpop.permute.xlu2 %725 }
 0x6ee   :  { %v728_v8 = vmul.f32 %v726_v51, %v722_v7 }
 0x6f0   :  { %730 = vrot.lane.b32.xlu1 %v728_v8, %s2353_s13 }
 0x6f5   :  { %v764_v10 = vpop.permute.xlu2 %763 }
 0x6f6   :  { %v2709_v11 = vadd.f32 %v764_v10, %v758_v63 }
 0x6f8   :  { %2161 = vtanh.f32 %v2709_v11  ;;  %752 = vrot.lane.b32.xlu1 %v2158_v55, %s2347_s18 }
 0x6fe   :  { %v2162_v12 = vpop.eup %2161 }
 0x6ff   :  { %769 = vrot.lane.b32.xlu2 %v2162_v12, %s2347_s18 }
 0x707   :  { %145 = vperm.xlu2 %2128, %v118_v14  }
 0x759   :  { %v770_v21 = vpop.permute.xlu2 %769 }
 0x761   :  { %v146_v44 = vpop.permute.xlu2 %145 }
 0x762   :  { %v731_v16 = vpop.permute.xlu1 %730  ;;  %v177_v49 = vmul.f32 %v2454_v5, %v146_v44  ;;  %v176_v53 = vmul.f32 %v2452_v4, %v146_v44 }
 0x763   :  { %v2718_v17 = vadd.f32 %v731_v16, %v723_v15 }
 0x764   :  { %v241_v50 = vadd.f32 %v209_v45, %v177_v49  ;;  %v240_v55 = vadd.f32 %v208_v52, %v176_v53 }
 0x765   :  { %2163 = vtanh.f32 %v2718_v17 }
 0x766   :  { %v268_v54 = vrot.slane %v241_v50, 4 }
 0x768   :  { %v277_v58 = vsel %vm272_vm0, %v240_v55, %v268_v54 }
 0x76a   :  { %v753_v3 = vpop.permute.xlu1 %752 }
 0x76b   :  { %v2164_v57 = vpop.eup %2163  ;;  %v754_v18 = vrot.slane %v753_v3, 4 }
 0x76c   :  { %736 = vrot.lane.b32.xlu0 %v2164_v57, %s2347_s18 }
 0x76d   :  { %v756_v19 = vadd.f32 1.0, %v754_v18 }
 0x76f   :  { %v757_v20 = vmul.f32 0.5, %v756_v19 }
 0x771   :  { %v772_v22 = vmul.f32 %v770_v21, %v757_v20  ;;  %v119_v20 = vld [vmem:[%s3047_s0 + $0x14] sm:$0xf] }
 0x773   :  { %v773_v24 = vpack.c.bf16 %v772_v22, %v772_v22 }
 0x775   :  { %2055 = vmatmul.msk.bf16.vlgmr.msrb.gmra.mxu3 %vm409_vm1, %v773_v24  ;;  %2056 = vmatmul.msk.bf16.vlgmr.msrb.gmra.mxu0 %vm409_vm1, %v773_v24 }
 0x776   :  { %2057 = vmatmul.msk.bf16.vlgmr.msrb.gmra.mxu1 %vm409_vm1, %v773_v24  ;;  %1017 = vmatpush.bf16.msrb.mxu3 %v2470_v23 }
 0x777   :  { %1030 = vmatpush.bf16.msrb.mxu0 %v2481_v27  ;;  %1043 = vmatpush.bf16.msrb.mxu1 %v2483_v28 }
 0x77a   :  { %1018 = vmatpush.bf16.msrb.mxu3 %v2494_v32 }
 0x77b   :  { %1031 = vmatpush.bf16.msrb.mxu0 %v2507_v36  ;;  %1044 = vmatpush.bf16.msrb.mxu1 %v2518_v40 }
 0x77e   :  { %1019 = vmatpush.bf16.msrb.mxu3 %v2536_v46 }
 0x77f   :  { %1032 = vmatpush.bf16.msrb.mxu0 %v2540_v47  ;;  %1045 = vmatpush.bf16.msrb.mxu1 %v2542_v48 }
 0x782   :  { %1020 = vmatpush.bf16.msrb.mxu3 %v2565_v56 }
 0x783   :  { %1033 = vmatpush.bf16.msrb.mxu0 %v2576_v60  ;;  %1046 = vmatpush.bf16.msrb.mxu1 %v2578_v61 }
 0x7de   :  { %v737_v9 = vpop.permute.xlu0 %736 }
 0x7df   :  { %v739_v25 = vmul.f32 %v737_v9, %v722_v7 }
 0x7e1   :  { %v817_v26 = vpack.c.bf16 %v739_v25, %v739_v25 }
 0x7e3   :  { %819 = vrot.lane.b32.xlu0 %v817_v26, %s2353_s13 }
 0x7f2   :  { %v799_v30 = vpop.f32.mrf.mxu0 }
 0x7f3   :  { %v812_v31 = vpop.f32.mrf.mxu1  ;;  %v862_v33 = vrot.slane %v799_v30, 4 }
 0x7f4   :  { %v816_v62 = vadd.f32 %v2615_v13, %v812_v31 }
 0x7f8   :  { %v786_v34 = vpop.f32.mrf.mxu3 }
 0x7f9   :  { %v863_v35 = vsel %vm272_vm0, %v786_v34, %v862_v33 }
 0x7fa   :  { %v801_v37 = vpop.f32.mrf.mxu0  ;;  %v865_v59 = vadd.f32 %v863_v35, %v277_v58 }
 0x7fb   :  { %v814_v39 = vpop.f32.mrf.mxu1 }
 0x7fc   :  { %2165 = vtanh.f32 %v865_v59 }
 0x800   :  { %v788_v41 = vpop.f32.mrf.mxu3 }
 0x802   :  { %v2166_v2 = vpop.eup %2165 }
 0x803   :  { %v867_v7 = vadd.f32 1.0, %v2166_v2  ;;  %v877_v63 = vrot.slane %v2166_v2, 4 }
 0x805   :  { %v868_v8 = vmul.f32 0.5, %v867_v7 }
 0x807   :  { %v879_v10 = vmul.f32 %v877_v63, %v868_v8  ;;  %v876_v3 = vmul.f32 %v868_v8, %v2709_v11 }
 0x855   :  { %v820_v42 = vpop.permute.xlu0 %819 }
 0x856   :  { %2058 = vmatmul.msk.bf16.vlgmr.msrb.gmra.mxu2 %vm466_vm2, %v820_v42 }
 0x857   :  { %1066 = vmatpush.bf16.msrb.mxu2 %v2485_v29 }
 0x85b   :  { %1067 = vmatpush.bf16.msrb.mxu2 %v2512_v38 }
 0x8d9   :  { %v833_v0 = vpop.f32.mrf.mxu2 }
 0x8da   :  { %v837_v1 = vadd.f32 %v833_v0, %v816_v62 }
 0x8dc   :  { %2167 = vtanh.f32 %v837_v1 }
 0x8e1   :  { %v835_v6 = vpop.f32.mrf.mxu2 }
 0x8e2   :  { %v2168_v51 = vpop.eup %2167 }
 0x8e3   :  { %843 = vrot.lane.b32.xlu1 %v2168_v51, %s2347_s18  ;;  %v839_v12 = vadd.f32 1.0, %v2168_v51 }
 0x8e5   :  { %v840_v14 = vmul.f32 0.5, %v839_v12 }
 0x8e7   :  { %v841_v21 = vmul.f32 %v840_v14, %v2718_v17 }
 0x8eb   :  { %881 = vrot.lane.b32.xlu1 %v879_v10, %s2347_s18 }
 0x955   :  { %v844_v15 = vpop.permute.xlu1 %843 }
 0x956   :  { %v846_v16 = vmul.f32 %v844_v15, %v840_v14 }
 0x958   :  { %848 = vrot.lane.b32.xlu0 %v846_v16, %s2353_s13 }
 0x95d   :  { %v882_v57 = vpop.permute.xlu1 %881 }
 0x95e   :  { %v2750_v18 = vadd.f32 %v882_v57, %v876_v3 }
 0x960   :  { %2169 = vtanh.f32 %v2750_v18  ;;  %870 = vrot.lane.b32.xlu0 %v2166_v2, %s2347_s18 }
 0x966   :  { %v2170_v19 = vpop.eup %2169 }
 0x967   :  { %887 = vrot.lane.b32.xlu1 %v2170_v19, %s2347_s18  ;;  %v120_v19 = vld [vmem:[%s3047_s0 + $0x18] sm:$0xf] }
 0x96f   :  { %150 = vperm.xlu1 %2129, %v119_v20  }
 0x9ca   :  { %v849_v22 = vpop.permute.xlu0 %848 }
 0x9cb   :  { %v2759_v24 = vadd.f32 %v849_v22, %v841_v21 }
 0x9cd   :  { %2171 = vtanh.f32 %v2759_v24 }
 0x9d2   :  { %v871_v11 = vpop.permute.xlu0 %870 }
 0x9d3   :  { %v2172_v9 = vpop.eup %2171  ;;  %v872_v25 = vrot.slane %v871_v11, 4 }
 0x9d4   :  { %854 = vrot.lane.b32.xlu2 %v2172_v9, %s2347_s18 }
 0x9d5   :  { %v874_v26 = vadd.f32 1.0, %v872_v25 }
 0x9d7   :  { %v875_v30 = vmul.f32 0.5, %v874_v26 }
 0x9d9   :  { %v888_v31 = vpop.permute.xlu1 %887 }
 0x9da   :  { %v890_v33 = vmul.f32 %v888_v31, %v875_v30 }
 0x9dc   :  { %v891_v34 = vpack.c.bf16 %v890_v33, %v890_v33 }
 0x9de   :  { %2059 = vmatmul.msk.bf16.vlgmr.msra.gmra.mxu3 %vm409_vm1, %v891_v34  ;;  %2060 = vmatmul.msk.bf16.vlgmr.msra.gmra.mxu0 %vm409_vm1, %v891_v34 }
 0x9df   :  { %2061 = vmatmul.msk.bf16.vlgmr.msra.gmra.mxu1 %vm409_vm1, %v891_v34  ;;  %1135 = vmatpush.bf16.msra.mxu3 %v2470_v23 }
 0x9e0   :  { %1148 = vmatpush.bf16.msra.mxu0 %v2481_v27  ;;  %1161 = vmatpush.bf16.msra.mxu1 %v2483_v28 }
 0x9e3   :  { %1136 = vmatpush.bf16.msra.mxu3 %v2494_v32 }
 0x9e4   :  { %1149 = vmatpush.bf16.msra.mxu0 %v2507_v36  ;;  %1162 = vmatpush.bf16.msra.mxu1 %v2518_v40 }
 0x9e7   :  { %1137 = vmatpush.bf16.msra.mxu3 %v2536_v46 }
 0x9e8   :  { %1150 = vmatpush.bf16.msra.mxu0 %v2540_v47  ;;  %1163 = vmatpush.bf16.msra.mxu1 %v2542_v48 }
 0x9eb   :  { %1138 = vmatpush.bf16.msra.mxu3 %v2565_v56  ;;  %v189_v56 = vld [vmem:[#allocation3 + $0xa] sm:$0x3] }
 0x9ec   :  { %1151 = vmatpush.bf16.msra.mxu0 %v2576_v60  ;;  %1164 = vmatpush.bf16.msra.mxu1 %v2578_v61  ;;  %v151_v60 = vpop.permute.xlu1 %150  ;;  %v211_v43 = vperm.slane %v189_v56, 1  ;;  %v210_v49 = vperm.slane %v189_v56, 0 }
 0x9ed   :  { %v179_v44 = vmul.f32 %v2454_v5, %v151_v60  ;;  %v178_v50 = vmul.f32 %v2452_v4, %v151_v60 }
 0x9ef   :  { %v243_v45 = vadd.f32 %v211_v43, %v179_v44  ;;  %v242_v53 = vadd.f32 %v210_v49, %v178_v50 }
 0x9f1   :  { %v269_v52 = vrot.slane %v243_v45, 4 }
 0x9f3   :  { %v278_v54 = vsel %vm272_vm0, %v242_v53, %v269_v52 }
 0xa2e   :  { %v855_v23 = vpop.permute.xlu2 %854 }
 0xa2f   :  { %v857_v27 = vmul.f32 %v855_v23, %v840_v14 }
 0xa31   :  { %v935_v17 = vpack.c.bf16 %v857_v27, %v857_v27 }
 0xa33   :  { %937 = vrot.lane.b32.xlu2 %v935_v17, %s2353_s13 }
 0xa5b   :  { %v917_v32 = vpop.f32.mrf.mxu0 }
 0xa5c   :  { %v930_v36 = vpop.f32.mrf.mxu1  ;;  %v980_v35 = vrot.slane %v917_v32, 4 }
 0xa5d   :  { %v934_v58 = vadd.f32 %v2615_v13, %v930_v36 }
 0xa61   :  { %v904_v37 = vpop.f32.mrf.mxu3 }
 0xa62   :  { %v981_v46 = vsel %vm272_vm0, %v904_v37, %v980_v35 }
 0xa63   :  { %v919_v47 = vpop.f32.mrf.mxu0  ;;  %v983_v55 = vadd.f32 %v981_v46, %v278_v54 }
 0xa64   :  { %v932_v39 = vpop.f32.mrf.mxu1 }
 0xa65   :  { %2173 = vtanh.f32 %v983_v55 }
 0xa69   :  { %v906_v41 = vpop.f32.mrf.mxu3 }
 0xa6b   :  { %v2174_v0 = vpop.eup %2173 }
 0xa6c   :  { %v985_v2 = vadd.f32 1.0, %v2174_v0  ;;  %v995_v51 = vrot.slane %v2174_v0, 4 }
 0xa6e   :  { %v986_v7 = vmul.f32 0.5, %v985_v2 }
 0xa70   :  { %v997_v8 = vmul.f32 %v995_v51, %v986_v7  ;;  %v994_v15 = vmul.f32 %v986_v7, %v2750_v18 }
 0xa8d   :  { %v938_v42 = vpop.permute.xlu2 %937 }
 0xa8e   :  { %2062 = vmatmul.msk.bf16.vlgmr.msra.gmra.mxu2 %vm466_vm2, %v938_v42 }
 0xa8f   :  { %1184 = vmatpush.bf16.msra.mxu2 %v2485_v29 }
 0xa93   :  { %1185 = vmatpush.bf16.msra.mxu2 %v2512_v38 }
 0xb11   :  { %v951_v59 = vpop.f32.mrf.mxu2 }
 0xb12   :  { %v955_v62 = vadd.f32 %v951_v59, %v934_v58 }
 0xb14   :  { %2175 = vtanh.f32 %v955_v62 }
 0xb19   :  { %v953_v1 = vpop.f32.mrf.mxu2 }
 0xb1a   :  { %v2176_v6 = vpop.eup %2175 }
 0xb1b   :  { %961 = vrot.lane.b32.xlu0 %v2176_v6, %s2347_s18  ;;  %v957_v63 = vadd.f32 1.0, %v2176_v6 }
 0xb1d   :  { %v958_v10 = vmul.f32 0.5, %v957_v63  ;;  %v121_v63 = vld [vmem:[%s3047_s0 + $0x1c] sm:$0xf] }
 0xb1f   :  { %v959_v20 = vmul.f32 %v958_v10, %v2759_v24 }
 0xb23   :  { %999 = vrot.lane.b32.xlu0 %v997_v8, %s2347_s18 }
 0xb8d   :  { %v962_v12 = vpop.permute.xlu0 %961 }
 0xb8e   :  { %v964_v14 = vmul.f32 %v962_v12, %v958_v10 }
 0xb90   :  { %966 = vrot.lane.b32.xlu2 %v964_v14, %s2353_s13 }
 0xb95   :  { %v1000_v16 = vpop.permute.xlu0 %999 }
 0xb96   :  { %v2791_v3 = vadd.f32 %v1000_v16, %v994_v15 }
 0xb98   :  { %2177 = vtanh.f32 %v2791_v3  ;;  %988 = vrot.lane.b32.xlu2 %v2174_v0, %s2347_s18 }
 0xb9e   :  { %v2178_v57 = vpop.eup %2177 }
 0xb9f   :  { %1005 = vrot.lane.b32.xlu0 %v2178_v57, %s2347_s18 }
 0xba7   :  { %155 = vperm.xlu0 %2127, %v120_v19  }
 0xbea   :  { %v967_v21 = vpop.permute.xlu2 %966 }
 0xbeb   :  { %v2800_v22 = vadd.f32 %v967_v21, %v959_v20 }
 0xbed   :  { %2179 = vtanh.f32 %v2800_v22 }
 0xbf2   :  { %v989_v11 = vpop.permute.xlu2 %988 }
 0xbf3   :  { %v2180_v18 = vpop.eup %2179  ;;  %v990_v9 = vrot.slane %v989_v11, 4 }
 0xbf4   :  { %972 = vrot.lane.b32.xlu1 %v2180_v18, %s2347_s18 }
 0xbf5   :  { %v992_v25 = vadd.f32 1.0, %v990_v9 }
 0xbf7   :  { %v993_v26 = vmul.f32 0.5, %v992_v25 }
 0xc11   :  { %v1006_v30 = vpop.permute.xlu0 %1005 }
 0xc12   :  { %v1008_v31 = vmul.f32 %v1006_v30, %v993_v26 }
 0xc14   :  { %v1009_v33 = vpack.c.bf16 %v1008_v31, %v1008_v31 }
 0xc16   :  { %2063 = vmatmul.msk.bf16.vlgmr.msrb.gmra.mxu3 %vm409_vm1, %v1009_v33  ;;  %2064 = vmatmul.msk.bf16.vlgmr.msrb.gmra.mxu0 %vm409_vm1, %v1009_v33 }
 0xc17   :  { %2065 = vmatmul.msk.bf16.vlgmr.msrb.gmra.mxu1 %vm409_vm1, %v1009_v33  ;;  %1273 = vmatpush.bf16.msrb.mxu0 %v2483_v28 }
 0xc18   :  { %1259 = vmatpush.bf16.msrb.mxu3 %v2485_v29 }
 0xc1b   :  { %1274 = vmatpush.bf16.msrb.mxu0 %v2518_v40 }
 0xc1c   :  { %1260 = vmatpush.bf16.msrb.mxu3 %v2512_v38  ;;  %v190_v38 = vld [vmem:[#allocation3 + $0xc] sm:$0x3] }
 0xc1d   :  { %v212_v39 = vperm.slane %v190_v38, 0 }
 0xc1f   :  { %1275 = vmatpush.bf16.msrb.mxu0 %v2542_v48  ;;  %v156_v48 = vpop.permute.xlu0 %155 }
 0xc20   :  { %v181_v46 = vmul.f32 %v2454_v5, %v156_v48  ;;  %v180_v41 = vmul.f32 %v2452_v4, %v156_v48 }
 0xc22   :  { %v244_v56 = vadd.f32 %v212_v39, %v180_v41 }
 0xc23   :  { %1276 = vmatpush.bf16.msrb.mxu0 %v2578_v61  ;;  %v213_v61 = vperm.slane %v190_v38, 1 }
 0xc25   :  { %v245_v47 = vadd.f32 %v213_v61, %v181_v46 }
 0xc27   :  { %v270_v42 = vrot.slane %v245_v47, 4 }
 0xc29   :  { %v279_v60 = vsel %vm272_vm0, %v244_v56, %v270_v42 }
 0xc66   :  { %v973_v24 = vpop.permute.xlu1 %972 }
 0xc67   :  { %v975_v34 = vmul.f32 %v973_v24, %v958_v10 }
 0xc69   :  { %v1053_v23 = vpack.c.bf16 %v975_v34, %v975_v34 }
 0xc6b   :  { %1055 = vrot.lane.b32.xlu1 %v1053_v23, %s2353_s13 }
 0xc93   :  { %v1035_v27 = vpop.f32.mrf.mxu0 }
 0xc94   :  { %v1048_v17 = vpop.f32.mrf.mxu1  ;;  %v1098_v32 = vrot.slane %v1035_v27, 4 }
 0xc95   :  { %v1052_v44 = vadd.f32 %v2615_v13, %v1048_v17  ;;  %v191_v17 = vld [vmem:[#allocation3 + $0xe] sm:$0x3] }
 0xc99   :  { %v1022_v36 = vpop.f32.mrf.mxu3 }
 0xc9a   :  { %v1099_v28 = vsel %vm272_vm0, %v1022_v36, %v1098_v32  ;;  %v215_v36 = vperm.slane %v191_v17, 1 }
 0xc9b   :  { %v1037_v29 = vpop.f32.mrf.mxu0  ;;  %v1101_v43 = vadd.f32 %v1099_v28, %v279_v60 }
 0xc9c   :  { %v1050_v35 = vpop.f32.mrf.mxu1 }
 0xc9d   :  { %2181 = vtanh.f32 %v1101_v43  ;;  %v214_v35 = vperm.slane %v191_v17, 0  ;;  %v1310_v17 = vld [vmem:[#allocation7] sm:$0xff] }
 0xca1   :  { %v1024_v40 = vpop.f32.mrf.mxu3 }
 0xca3   :  { %v2182_v50 = vpop.eup %2181 }
 0xca4   :  { %v1103_v53 = vadd.f32 1.0, %v2182_v50  ;;  %v1113_v58 = vrot.slane %v2182_v50, 4 }
 0xca6   :  { %v1104_v55 = vmul.f32 0.5, %v1103_v53 }
 0xca8   :  { %v1115_v59 = vmul.f32 %v1113_v58, %v1104_v55  ;;  %v1112_v6 = vmul.f32 %v1104_v55, %v2791_v3 }
 0xcdd   :  { %v1056_v37 = vpop.permute.xlu1 %1055 }
 0xcde   :  { %2066 = vmatmul.msk.bf16.vlgmr.msrb.gmra.mxu2 %vm466_vm2, %v1056_v37 }
 0xd61   :  { %v1069_v45 = vpop.f32.mrf.mxu2 }
 0xd62   :  { %v1073_v49 = vadd.f32 %v1069_v45, %v1052_v44 }
 0xd64   :  { %2183 = vtanh.f32 %v1073_v49 }
 0xd69   :  { %v1071_v52 = vpop.f32.mrf.mxu2 }
 0xd6a   :  { %v2184_v54 = vpop.eup %2183 }
 0xd6b   :  { %1079 = vrot.lane.b32.xlu2 %v2184_v54, %s2347_s18  ;;  %v1075_v62 = vadd.f32 1.0, %v2184_v54 }
 0xd6d   :  { %v1076_v0 = vmul.f32 0.5, %v1075_v62 }
 0xd6f   :  { %v1077_v10 = vmul.f32 %v1076_v0, %v2800_v22 }
 0xd73   :  { %1117 = vrot.lane.b32.xlu2 %v1115_v59, %s2347_s18 }
 0xdc5   :  { %v1080_v1 = vpop.permute.xlu2 %1079 }
 0xdc6   :  { %v1082_v2 = vmul.f32 %v1080_v1, %v1076_v0 }
 0xdc8   :  { %1084 = vrot.lane.b32.xlu1 %v1082_v2, %s2353_s13 }
 0xdcd   :  { %v1118_v7 = vpop.permute.xlu2 %1117 }
 0xdce   :  { %v2824_v51 = vadd.f32 %v1118_v7, %v1112_v6 }
 0xdd0   :  { %2185 = vtanh.f32 %v2824_v51  ;;  %1106 = vrot.lane.b32.xlu1 %v2182_v50, %s2347_s18 }
 0xdd6   :  { %v2186_v8 = vpop.eup %2185 }
 0xdd7   :  { %1123 = vrot.lane.b32.xlu2 %v2186_v8, %s2347_s18 }
 0xddf   :  { %160 = vperm.xlu2 %2128, %v121_v63  }
 0xe31   :  { %v1124_v20 = vpop.permute.xlu2 %1123 }
 0xe39   :  { %v161_v32 = vpop.permute.xlu2 %160 }
 0xe3a   :  { %v1085_v12 = vpop.permute.xlu1 %1084  ;;  %v183_v28 = vmul.f32 %v2454_v5, %v161_v32  ;;  %v182_v40 = vmul.f32 %v2452_v4, %v161_v32 }
 0xe3b   :  { %v1087_v14 = vadd.f32 %v1085_v12, %v1077_v10 }
 0xe3c   :  { %v247_v29 = vadd.f32 %v215_v36, %v183_v28  ;;  %v246_v38 = vadd.f32 %v214_v35, %v182_v40  ;;  %v2131_v40 = vld [vmem:[%s3052_s5 + $0x1] ss:$0 sm:$0xff] }
 0xe3d   :  { %2187 = vtanh.f32 %v1087_v14 }
 0xe3e   :  { %v271_v37 = vrot.slane %v247_v29, 4 }
 0xe40   :  { %v280_v48 = vsel %vm272_vm0, %v246_v38, %v271_v37 }
 0xe42   :  { %v1107_v15 = vpop.permute.xlu1 %1106 }
 0xe43   :  { %v2188_v16 = vpop.eup %2187  ;;  %v1108_v3 = vrot.slane %v1107_v15, 4 }
 0xe44   :  { %1090 = vrot.lane.b32.xlu0 %v2188_v16, %s2347_s18 }
 0xe45   :  { %v1110_v57 = vadd.f32 1.0, %v1108_v3 }
 0xe47   :  { %v1111_v19 = vmul.f32 0.5, %v1110_v57 }
 0xe49   :  { %v1126_v21 = vmul.f32 %v1124_v20, %v1111_v19  ;;  %v2219_v19 = vld [vmem:[%s3052_s5] ss:$0 sm:$0xff] }
 0xe4b   :  { %v1127_v18 = vpack.c.bf16 %v1126_v21, %v1126_v21 }
 0xe4d   :  { %2067 = vmatmul.msk.bf16.vlgmr.msra.gmra.mxu3 %vm409_vm1, %v1127_v18  ;;  %2068 = vmatmul.msk.bf16.vlgmr.msra.gmra.mxu0 %vm409_vm1, %v1127_v18 }
 0xe4e   :  { %2069 = vmatmul.msk.bf16.vlgmr.msra.gmra.mxu1 %vm409_vm1, %v1127_v18 }
 0xeb6   :  { %v1091_v22 = vpop.permute.xlu0 %1090 }
 0xeb7   :  { %v1093_v11 = vmul.f32 %v1091_v22, %v1076_v0 }
 0xeb9   :  { %v1171_v9 = vpack.c.bf16 %v1093_v11, %v1093_v11 }
 0xebb   :  { %1173 = vrot.lane.b32.xlu0 %v1171_v9, %s2353_s13 }
 0xeca   :  { %v1153_v25 = vpop.f32.mrf.mxu0 }
 0xecb   :  { %v1166_v26 = vpop.f32.mrf.mxu1  ;;  %v1216_v30 = vrot.slane %v1153_v25, 4 }
 0xecc   :  { %v1170_v46 = vadd.f32 %v2615_v13, %v1166_v26 }
 0xed0   :  { %v1140_v31 = vpop.f32.mrf.mxu3 }
 0xed1   :  { %v1217_v33 = vsel %vm272_vm0, %v1140_v31, %v1216_v30 }
 0xed2   :  { %v1155_v24 = vpop.f32.mrf.mxu0  ;;  %v1219_v61 = vadd.f32 %v1217_v33, %v280_v48 }
 0xed3   :  { %v1168_v34 = vpop.f32.mrf.mxu1 }
 0xed4   :  { %2189 = vtanh.f32 %v1219_v61  ;;  %v1313_v34 = vld [vmem:[#allocation7 + $0x18] sm:$0xff] }
 0xed5   :  { %1333 = vmatpush.msrb.mxu1 %v1313_v34 }
 0xed8   :  { %v1142_v23 = vpop.f32.mrf.mxu3 }
 0xed9   :  { %v1312_v23 = vld [vmem:[#allocation7 + $0x10] sm:$0xff] }
 0xeda   :  { %v2190_v41 = vpop.eup %2189  ;;  %1334 = vmatpush.msrb.mxu1 %v1312_v23 }
 0xedb   :  { %v1221_v56 = vadd.f32 1.0, %v2190_v41  ;;  %v1231_v43 = vrot.slane %v2190_v41, 4 }
 0xedd   :  { %v1222_v5 = vmul.f32 0.5, %v1221_v56 }
 0xedf   :  { %v1233_v4 = vmul.f32 %v1231_v43, %v1222_v5  ;;  %v1230_v55 = vmul.f32 %v1222_v5, %v2824_v51 }
 0xf2d   :  { %v1174_v27 = vpop.permute.xlu0 %1173 }
 0xf2e   :  { %2070 = vmatmul.msk.bf16.vlgmr.msra.gmra.mxu2 %vm466_vm2, %v1174_v27  ;;  %v1311_v27 = vld [vmem:[#allocation7 + $0x8] sm:$0xff] }
 0xf2f   :  { %1335 = vmatpush.msrb.mxu1 %v1311_v27 }
 0xf31   :  { %1336 = vmatpush.msrb.mxu1 %v1310_v17 }
 0xfb1   :  { %v1187_v47 = vpop.f32.mrf.mxu2 }
 0xfb2   :  { %v1191_v39 = vadd.f32 %v1187_v47, %v1170_v46  ;;  %v2362_v47 = vmov 1983009808  }
 0xfb4   :  { %2191 = vtanh.f32 %v1191_v39  ;;  %v1355_v39 = vunpack.c.l.s4 %v2362_v47 }
 0xfb6   :  { %v2884_v56 = vunpack.c.0.s8 %v1355_v39 }
 0xfb9   :  { %v1189_v42 = vpop.f32.mrf.mxu2 }
 0xfba   :  { %v2192_v60 = vpop.eup %2191 }
 0xfbb   :  { %1197 = vrot.lane.b32.xlu1 %v2192_v60, %s2347_s18  ;;  %v1193_v44 = vadd.f32 1.0, %v2192_v60 }
 0xfbd   :  { %v1194_v45 = vmul.f32 0.5, %v1193_v44 }
 0xfbf   :  { %v1195_v13 = vmul.f32 %v1194_v45, %v1087_v14 }
 0xfc3   :  { %1235 = vrot.lane.b32.xlu1 %v1233_v4, %s2347_s18  ;;  %v2363_v4 = vmov 1934713408  }
 0xfc4   :  { %v1369_v44 = vunpack.c.l.s4 %v2363_v4 }
0x102d   :  { %v1198_v49 = vpop.permute.xlu1 %1197 }
0x102e   :  { %v1200_v50 = vmul.f32 %v1198_v49, %v1194_v45 }
0x1030   :  { %1202 = vrot.lane.b32.xlu0 %v1200_v50, %s2353_s13  ;;  %v2892_v50 = vunpack.c.0.s8 %v1369_v44 }
0x1035   :  { %v1236_v54 = vpop.permute.xlu1 %1235 }
0x1036   :  { %v1238_v58 = vadd.f32 %v1236_v54, %v1230_v55 }
0x1038   :  { %1224 = vrot.lane.b32.xlu0 %v2190_v41, %s2347_s18 }
0x10a2   :  { %v1203_v52 = vpop.permute.xlu0 %1202 }
0x10a3   :  { %v1205_v53 = vadd.f32 %v1203_v52, %v1195_v13 }
0x10a5   :  { %2193 = vtanh.f32 %v1205_v53 }
0x10a6   :  { %2195 = vtanh.f32 %v1238_v58 }
0x10aa   :  { %v1225_v0 = vpop.permute.xlu0 %1224 }
0x10ab   :  { %v2194_v59 = vpop.eup %2193  ;;  %v1226_v1 = vrot.slane %v1225_v0, 4 }
0x10ac   :  { %1208 = vrot.lane.b32.xlu2 %v2194_v59, %s2347_s18  ;;  %v2196_v62 = vpop.eup %2195 }
0x10ad   :  { %v1228_v7 = vadd.f32 1.0, %v1226_v1 }
0x10af   :  { %v1229_v63 = vmul.f32 0.5, %v1228_v7 }
0x10b4   :  { %1241 = vrot.lane.b32.xlu2 %v2196_v62, %s2347_s18 }
0x1106   :  { %v1209_v2 = vpop.permute.xlu2 %1208 }
0x1107   :  { %v1211_v6 = vmul.f32 %v1209_v2, %v1194_v45 }
0x1109   :  { %v1246_v8 = vpack.c.bf16 %v1211_v6, %v1211_v6 }
0x110b   :  { %1248 = vrot.lane.b32.xlu1 %v1246_v8, %s2353_s13 }
0x110e   :  { %v1242_v10 = vpop.permute.xlu2 %1241 }
0x110f   :  { %v1244_v12 = vmul.f32 %v1242_v10, %v1229_v63 }
0x1111   :  { %v1245_v51 = vpack.c.bf16 %v1244_v12, %v1244_v12  ;;  %1304 = vst [vmem:[#allocation1] ss:$2 sm:$0xff] %v1244_v12 }
0x1113   :  { %2072 = vmatmul.msk.bf16.vlgmr.msrb.gmra.mxu0 %vm409_vm1, %v1245_v51 }
0x1118   :  { %v1305_v22 = vld.sshfl [vmem:[#allocation1] sm:$0xff pattern:$0x75316420] }
0x117d   :  { %v1249_v14 = vpop.permute.xlu1 %1248 }
0x117e   :  { %2071 = vmatmul.msk.bf16.vlgmr.msrb.gmra.mxu3 %vm466_vm2, %v1249_v14 }
0x1190   :  { %v1278_v15 = vpop.f32.mrf.mxu0 }
0x1198   :  { %v1280_v16 = vpop.f32.mrf.mxu0 }
0x1201   :  { %v1262_v3 = vpop.f32.mrf.mxu3 }
0x1202   :  { %v1279_v57 = vadd.f32 %v1278_v15, %v1262_v3 }
0x1204   :  { %v1282_v20 = vadd.f32 %v2219_v19, %v1279_v57 }
0x1206   :  { %2197 = vtanh.f32 %v1282_v20 }
0x1209   :  { %v1264_v21 = vpop.f32.mrf.mxu3 }
0x120c   :  { %v2198_v18 = vpop.eup %2197 }
0x120d   :  { %1288 = vrot.lane.b32.xlu0 %v2198_v18, %s2347_s18  ;;  %v1284_v11 = vadd.f32 1.0, %v2198_v18 }
0x120f   :  { %v1285_v9 = vmul.f32 0.5, %v1284_v11 }
0x1211   :  { %v1286_v30 = vmul.f32 %v1285_v9, %v1205_v53 }
0x1215   :  { %1306 = vrot.lane.b32.xlu0 %v1305_v22, %s2358_s21 }
0x127f   :  { %v1289_v25 = vpop.permute.xlu0 %1288 }
0x1280   :  { %v1291_v26 = vmul.f32 %v1289_v25, %v1285_v9 }
0x1282   :  { %1293 = vrot.lane.b32.xlu1 %v1291_v26, %s2353_s13 }
0x1287   :  { %v1307_v28 = vpop.permute.xlu0 %1306 }
0x12f4   :  { %v1294_v31 = vpop.permute.xlu1 %1293 }
0x12f5   :  { %v1296_v33 = vadd.f32 %v1294_v31, %v1286_v30 }
0x12f7   :  { %2199 = vtanh.f32 %v1296_v33 }
0x12fd   :  { %v2200_v24 = vpop.eup %2199 }
0x12fe   :  { %1299 = vrot.lane.b32.xlu2 %v2200_v24, %s2347_s18 }
0x1358   :  { %v1300_v32 = vpop.permute.xlu2 %1299 }
0x1359   :  { %v1302_v36 = vmul.f32 %v1300_v32, %v1285_v9 }
0x135b   :  { %v1309_v29 = vadd.f32 %v1307_v28, %v1302_v36 }
0x135d   :  { %1317 = vrot.lane.b32.xlu1 %v1309_v29, %s2353_s13  ;;  %s2365_s13 = smov 24  }
0x13cf   :  { %v1318_v35 = vpop.permute.xlu1 %1317 }
0x13d0   :  { %2073 = vmatmul.msk.f32.vlgmr.msrb.gmra.mxu1 %vm466_vm2, %v1318_v35 }
0x144d   :  { %v1338_v37 = vpop.f32.mrf.mxu1 }
0x144e   :  { %v2866_v38 = vadd.f32 %v2131_v40, %v1338_v37 }
0x1450   :  { %1342 = vrot.lane.b32.xlu1 %v2866_v38, %s2359_s22  ;;  %1348 = vrot.lane.b32.xlu0 %v2866_v38, %s2360_s23 }
0x1451   :  { %1345 = vrot.lane.b32.xlu2 %v2866_v38, %s2361_s1 }
0x1458   :  { %1407 = vrot.lane.b32.xlu0 %v2866_v38, %s2358_s21 }
0x14ab   :  { %v1346_v48 = vpop.permute.xlu2 %1345 }
0x14ac   :  { %1478 = vrot.lane.b32.xlu0 %v1346_v48, %s2347_s18  ;;  %1411 = vrot.lane.b32.xlu2 %v1346_v48, %s2358_s21  ;;  %v1351_v41 = vrot.slane %v1346_v48, 4 }
0x14ae   :  { %v1353_v60 = vsel %vm1352_vm3, %v1351_v41, %v2866_v38 }
0x14af   :  { %v1357_v43 = vperm.slane %v1353_v60, %v2884_v56 }
0x14b1   :  { %v1366_v49 = vrot.slane %v1357_v43, 4 }
0x14c2   :  { %v2875_v61 = vpop.permute.xlu1 %1342  ;;  %v2877_v46 = vpop.permute.xlu0 %1348 }
0x14c3   :  { %1413 = vrot.lane.b32.xlu1 %v2877_v46, %s2358_s21  ;;  %1409 = vrot.lane.b32.xlu2 %v2875_v61, %s2358_s21  ;;  %v1358_v42 = vrot.slane %v2877_v46, 4 }
0x14c5   :  { %v1359_v5 = vsel %vm1352_vm3, %v1358_v42, %v2875_v61 }
0x14c6   :  { %v1363_v45 = vperm.slane %v1359_v5, %v2884_v56 }
0x14c8   :  { %v1364_v13 = vrot.slane %v1363_v45, 4  ;;  %v1367_v52 = vsel %vm1352_vm3, %v1363_v45, %v1366_v49 }
0x14c9   :  { %v1375_v53 = vperm.slane %v1367_v52, %v2892_v50 }
0x14ca   :  { %v1365_v55 = vsel %vm1352_vm3, %v1364_v13, %v1357_v43  ;;  %v1408_v0 = vpop.permute.xlu0 %1407 }
0x14cb   :  { %v1371_v59 = vperm.slane %v1365_v55, %v2892_v50  ;;  %v1378_v62 = vrot.slane %v1375_v53, 4 }
0x14cd   :  { %v1376_v2 = vrot.slane %v1371_v59, 4  ;;  %v1379_v6 = vsel %vm1352_vm3, 0.0, %v1378_v62  ;;  %v1380_v20 = vsel %vm1352_vm3, %v1378_v62, %v1371_v59 }
0x14ce   :  { %v1385_v63 = vrot.slane %v1379_v6, 4  ;;  %v1384_v25 = vperm.slane %v1380_v20, %v2884_v56 }
0x14cf   :  { %v1377_v12 = vsel %vm1352_vm3, 0.0, %v1376_v2 }
0x14d0   :  { %v1386_v3 = vsel %vm1352_vm3, %v1385_v63, %v1377_v12  ;;  %v1393_v32 = vrot.slane %v1384_v25, 4 }
0x14d1   :  { %v1390_v22 = vperm.slane %v1386_v3, %v2884_v56 }
0x14d3   :  { %v1391_v34 = vrot.slane %v1390_v22, 4  ;;  %v1394_v37 = vsel %vm1352_vm3, %v1390_v22, %v1393_v32 }
0x14d4   :  { %v1402_v42 = vperm.slane %v1394_v37, %v2892_v50 }
0x14d5   :  { %v1392_v28 = vsel %vm1352_vm3, %v1391_v34, %v1384_v25 }
0x14d6   :  { %v1398_v47 = vperm.slane %v1392_v28, %v2892_v50  ;;  %v1405_v45 = vrot.slane %v1402_v42, 4 }
0x14d8   :  { %v1403_v43 = vrot.slane %v1398_v47, 4  ;;  %v1406_v49 = vsel %vm1352_vm3, 0.0, %v1405_v45 }
0x14da   :  { %v1404_v44 = vsel %vm1352_vm3, 0.0, %v1403_v43 }
0x1506   :  { %v1412_v54 = vpop.permute.xlu2 %1411 }
0x1507   :  { %v1419_v58 = vrot.slane %v1412_v54, 4 }
0x1509   :  { %v1420_v1 = vsel %vm1352_vm3, %v1419_v58, %v1408_v0 }
0x150a   :  { %v1424_v7 = vperm.slane %v1420_v1, %v2884_v56 }
0x150c   :  { %v1433_v15 = vrot.slane %v1424_v7, 4 }
0x151d   :  { %v1410_v51 = vpop.permute.xlu2 %1409 }
0x1535   :  { %v1414_v8 = vpop.permute.xlu1 %1413 }
0x1536   :  { %v1425_v10 = vrot.slane %v1414_v8, 4 }
0x1538   :  { %v1426_v14 = vsel %vm1352_vm3, %v1425_v10, %v1410_v51 }
0x1539   :  { %v1430_v16 = vperm.slane %v1426_v14, %v2884_v56 }
0x153b   :  { %v1431_v57 = vrot.slane %v1430_v16, 4  ;;  %v1434_v19 = vsel %vm1352_vm3, %v1430_v16, %v1433_v15 }
0x153c   :  { %v1442_v21 = vperm.slane %v1434_v19, %v2892_v50 }
0x153d   :  { %v1432_v18 = vsel %vm1352_vm3, %v1431_v57, %v1424_v7  ;;  %v1479_v7 = vpop.permute.xlu0 %1478 }
0x153e   :  { %v1438_v11 = vperm.slane %v1432_v18, %v2892_v50  ;;  %v1445_v9 = vrot.slane %v1442_v21, 4 }
0x1540   :  { %v1443_v26 = vrot.slane %v1438_v11, 4  ;;  %v1446_v30 = vsel %vm1352_vm3, 0.0, %v1445_v9  ;;  %v1447_v31 = vsel %vm1352_vm3, %v1445_v9, %v1438_v11 }
0x1541   :  { %v1451_v33 = vperm.slane %v1447_v31, %v2884_v56  ;;  %v1452_v24 = vrot.slane %v1446_v30, 4 }
0x1542   :  { %v1444_v23 = vsel %vm1352_vm3, 0.0, %v1443_v26 }
0x1543   :  { %v1453_v27 = vsel %vm1352_vm3, %v1452_v24, %v1444_v23  ;;  %v1460_v17 = vrot.slane %v1451_v33, 4  ;;  %v1486_v24 = vrot.slane %v1479_v7, 4 }
0x1544   :  { %v1457_v36 = vperm.slane %v1453_v27, %v2884_v56 }
0x1546   :  { %v1461_v29 = vsel %vm1352_vm3, %v1457_v36, %v1460_v17  ;;  %v1458_v35 = vrot.slane %v1457_v36, 4 }
0x1547   :  { %v1469_v40 = vperm.slane %v1461_v29, %v2892_v50 }
0x1548   :  { %v1459_v48 = vsel %vm1352_vm3, %v1458_v35, %v1451_v33 }
0x1549   :  { %2078 = vmatpush.xpose.msk.msrb.mxu2 %vm1541_vm4, %v1469_v40  ;;  %v1465_v39 = vperm.slane %v1459_v48, %v2892_v50  ;;  %v1472_v41 = vrot.slane %v1469_v40, 4 }
0x154b   :  { %2074 = vmatpush.xpose.msk.msra.mxu3 %vm1541_vm4, %v1465_v39  ;;  %v1473_v60 = vsel %vm1352_vm3, 0.0, %v1472_v41  ;;  %v1470_v5 = vrot.slane %v1465_v39, 4 }
0x154c   :  { %2079 = vmatmul.msk.f32.vlgmr.msrb.gmra.mxu2 %vm1541_vm4, %v1402_v42 }
0x154d   :  { %v1471_v4 = vsel %vm1352_vm3, 0.0, %v1470_v5 }
0x154e   :  { %2075 = vmatmul.msk.f32.vlgmr.msra.gmra.mxu3 %vm1541_vm4, %v1398_v47  ;;  %2076 = vmatpush.xpose.msk.msra.mxu1 %vm1541_vm4, %v1471_v4 }
0x154f   :  { %2080 = vmatpush.xpose.msk.msrb.mxu3 %vm1541_vm4, %v1473_v60 }
0x1551   :  { %2077 = vmatmul.msk.f32.vlgmr.msra.gmra.mxu1 %vm1541_vm4, %v1404_v44 }
0x1556   :  { %2081 = vmatmul.msk.f32.vlgmr.msrb.gmra.mxu3 %vm1541_vm4, %v1406_v49 }
0x15ce   :  { %v1591_v13 = vpop.f32.mrf.mxu1 }
0x15cf   :  { %v1647_v52 = vmul.f32 0.35355338, %v1591_v13  ;;  %v1617_v53 = vpop.f32.mrf.mxu2 }
0x15d0   :  { %v1648_v54 = vmul.f32 0.35355338, %v1617_v53 }
0x15d1   :  { %v1565_v55 = vpop.f32.mrf.mxu3  ;;  %v1654_v58 = vsel %vm1650_vm5, %v1647_v52, -inf }
0x15d2   :  { %1655 = vmax.xlane.f32.xlu2 %v1654_v58  ;;  %v1657_v59 = vsel %vm1650_vm5, %v1648_v54, -inf  ;;  %v1646_v62 = vmul.f32 0.35355338, %v1565_v55 }
0x15d3   :  { %1658 = vmax.xlane.f32.xlu0 %v1657_v59 }
0x15d4   :  { %v1651_v1 = vsel %vm1650_vm5, %v1646_v62, -inf }
0x15d9   :  { %v1643_v0 = vpop.f32.mrf.mxu3 }
0x15da   :  { %v1649_v2 = vmul.f32 0.35355338, %v1643_v0  ;;  %1652 = vmax.xlane.f32.xlu2 %v1651_v1 }
0x15dc   :  { %v1660_v6 = vsel %vm1650_vm5, %v1649_v2, -inf }
0x15dd   :  { %1661 = vmax.xlane.f32.xlu1 %v1660_v6 }
0x15e7   :  { %1476 = vrot.lane.b32.xlu0 %v2875_v61, %s2347_s18 }
0x15f2   :  { %1480 = vrot.lane.b32.xlu2 %v2877_v46, %s2347_s18 }
0x15f6   :  { %1474 = vrot.lane.b32.xlu1 %v2866_v38, %s2347_s18  ;;  %s2364_s18 = smov 16  }
0x1645   :  { %v1656_v8 = vpop.xlane.xlu2 %1655 }
0x1646   :  { %v1659_v63 = vpop.xlane.xlu0 %1658  ;;  %v1664_v12 = vsub.f32 %v1647_v52, %v1656_v8 }
0x1647   :  { %v1665_v10 = vsub.f32 %v1648_v54, %v1659_v63 }
0x1648   :  { %v1669_v14 = vmul.f32 1.442695, %v1664_v12 }
0x1649   :  { %v1671_v51 = vmul.f32 1.442695, %v1665_v10 }
0x164b   :  { %2201 = vpow2.f32 %v1671_v51 }
0x164c   :  { %2203 = vpow2.f32 %v1669_v14 }
0x164d   :  { %v1653_v15 = vpop.xlane.xlu2 %1652 }
0x164e   :  { %v1663_v16 = vsub.f32 %v1646_v62, %v1653_v15 }
0x1650   :  { %v1667_v3 = vmul.f32 1.442695, %v1663_v16  ;;  %v1662_v57 = vpop.xlane.xlu1 %1661 }
0x1651   :  { %v2202_v19 = vpop.eup %2201  ;;  %v1666_v61 = vsub.f32 %v1649_v2, %v1662_v57 }
0x1652   :  { %2205 = vpow2.f32 %v1667_v3  ;;  %v1681_v46 = vsel %vm1650_vm5, %v2202_v19, 0.0  ;;  %v2204_v38 = vpop.eup %2203 }
0x1653   :  { %v1673_v20 = vmul.f32 1.442695, %v1666_v61  ;;  %1682 = vadd.xlane.f32.xlu1 %v1681_v46  ;;  %v1678_v22 = vsel %vm1650_vm5, %v2204_v38, 0.0 }
0x1655   :  { %2207 = vpow2.f32 %v1673_v20  ;;  %v1481_v25 = vpop.permute.xlu2 %1480 }
0x1656   :  { %v1492_v30 = vrot.slane %v1481_v25, 4 }
0x1658   :  { %v2206_v21 = vpop.eup %2205 }
0x1659   :  { %v1675_v18 = vsel %vm1650_vm5, %v2206_v21, 0.0  ;;  %v1477_v26 = vpop.permute.xlu0 %1476 }
0x165a   :  { %1676 = vadd.xlane.f32.xlu2 %v1675_v18  ;;  %v1493_v31 = vsel %vm1352_vm3, %v1492_v30, %v1477_v26 }
0x165b   :  { %v2208_v11 = vpop.eup %2207  ;;  %1679 = vadd.xlane.f32.xlu1 %v1678_v22  ;;  %v1497_v33 = vperm.slane %v1493_v31, %v2884_v56 }
0x165c   :  { %v1684_v9 = vsel %vm1650_vm5, %v2208_v11, 0.0 }
0x165d   :  { %1685 = vadd.xlane.f32.xlu0 %v1684_v9  ;;  %v1498_v27 = vrot.slane %v1497_v33, 4 }
0x1668   :  { %v1475_v34 = vpop.permute.xlu1 %1474 }
0x1669   :  { %v1487_v23 = vsel %vm1352_vm3, %v1486_v24, %v1475_v34 }
0x166a   :  { %v1491_v17 = vperm.slane %v1487_v23, %v2884_v56 }
0x166c   :  { %v1499_v32 = vsel %vm1352_vm3, %v1498_v27, %v1491_v17  ;;  %v1500_v36 = vrot.slane %v1491_v17, 4 }
0x166d   :  { %v1505_v28 = vperm.slane %v1499_v32, %v2892_v50 }
0x166e   :  { %v1501_v29 = vsel %vm1352_vm3, %v1497_v33, %v1500_v36 }
0x166f   :  { %v1509_v35 = vperm.slane %v1501_v29, %v2892_v50  ;;  %v1510_v40 = vrot.slane %v1505_v28, 4 }
0x1671   :  { %v1512_v37 = vrot.slane %v1509_v35, 4  ;;  %v1511_v42 = vsel %vm1352_vm3, 0.0, %v1510_v40 }
0x1673   :  { %v1513_v48 = vsel %vm1352_vm3, 0.0, %v1512_v37  ;;  %v1514_v47 = vsel %vm1352_vm3, %v1512_v37, %v1505_v28 }
0x1674   :  { %v1518_v39 = vperm.slane %v1514_v47, %v2884_v56  ;;  %v1519_v41 = vrot.slane %v1513_v48, 4 }
0x1676   :  { %v1520_v60 = vsel %vm1352_vm3, %v1519_v41, %v1511_v42  ;;  %v1527_v5 = vrot.slane %v1518_v39, 4  ;;  %v1873_v41 = vld [vmem:[#allocation8 + $0x8] sm:$0xff]  ;;  %v1872_v42 = vld [vmem:[#allocation8] sm:$0xff] }
0x1677   :  { %v1524_v43 = vperm.slane %v1520_v60, %v2884_v56  ;;  %v1904_v60 = vld [vmem:[#allocation10 + $0x18] sm:$0xff] }
0x1679   :  { %v1528_v4 = vsel %vm1352_vm3, %v1524_v43, %v1527_v5  ;;  %v1525_v44 = vrot.slane %v1524_v43, 4  ;;  %v1903_v5 = vld [vmem:[#allocation10 + $0x10] sm:$0xff] }
0x167a   :  { %v1536_v45 = vperm.slane %v1528_v4, %v2892_v50 }
0x167b   :  { %v1526_v49 = vsel %vm1352_vm3, %v1525_v44, %v1518_v39  ;;  %v1874_v39 = vld [vmem:[#allocation8 + $0x10] sm:$0xff] }
0x167c   :  { %2086 = vmatpush.msk.msra.mxu2 %vm272_vm0, %v1536_v45  ;;  %v1532_v13 = vperm.slane %v1526_v49, %v2892_v50  ;;  %v1539_v52 = vrot.slane %v1536_v45, 4 }
0x167e   :  { %2082 = vmatpush.msk.msra.mxu0 %vm272_vm0, %v1532_v13  ;;  %v1540_v53 = vsel %vm1352_vm3, 0.0, %v1539_v52  ;;  %v1537_v54 = vrot.slane %v1532_v13, 4  ;;  %v1902_v13 = vld [vmem:[#allocation10 + $0x8] sm:$0xff]  ;;  %v1901_v52 = vld [vmem:[#allocation10] sm:$0xff] }
0x167f   :  { %2088 = vmatpush.msk.msra.mxu3 %vm272_vm0, %v1540_v53  ;;  %v1938_v53 = vld [vmem:[%s3056_s9 + $0x38] sm:$0xff] }
0x1680   :  { %v1538_v55 = vsel %vm1352_vm3, 0.0, %v1537_v54  ;;  %v1937_v54 = vld [vmem:[%s3056_s9 + $0x30] sm:$0xff]  ;;  %1952 = vmatpush.msrb.mxu2 %v1938_v53 }
0x1681   :  { %2084 = vmatpush.msk.msrb.mxu1 %vm272_vm0, %v1538_v55  ;;  %v1936_v55 = vld [vmem:[%s3056_s9 + $0x28] sm:$0xff] }
0x1682   :  { %1953 = vmatpush.msrb.mxu2 %v1937_v54 }
0x1683   :  { %1922 = vmatpush.msra.mxu1 %v1904_v60 }
0x1684   :  { %1954 = vmatpush.msrb.mxu2 %v1936_v55 }
0x1685   :  { %1923 = vmatpush.msra.mxu1 %v1903_v5 }
0x1687   :  { %1924 = vmatpush.msra.mxu1 %v1902_v13 }
0x1689   :  { %1925 = vmatpush.msra.mxu1 %v1901_v52 }
0x16c6   :  { %v1683_v58 = vpop.xlane.xlu1 %1682 }
0x16c7   :  { %2209 = vrcp.f32 %v1683_v58  ;;  %v1935_v58 = vld [vmem:[%s3056_s9 + $0x20] sm:$0xff] }
0x16c8   :  { %1955 = vmatpush.msrb.mxu2 %v1935_v58 }
0x16cd   :  { %v2210_v59 = vpop.eup %2209  ;;  %v1677_v62 = vpop.xlane.xlu2 %1676 }
0x16ce   :  { %v1693_v0 = vmul.f32 %v2210_v59, %v2202_v19  ;;  %2211 = vrcp.f32 %v1677_v62  ;;  %v1680_v1 = vpop.xlane.xlu1 %1679  ;;  %v1934_v59 = vld [vmem:[%s3056_s9 + $0x18] sm:$0xff]  ;;  %v2132_v62 = vld [vmem:[%s3052_s5 + $0x2] ss:$0 sm:$0xff] }
0x16cf   :  { %2213 = vrcp.f32 %v1680_v1  ;;  %1956 = vmatpush.msrb.mxu2 %v1934_v59 }
0x16d0   :  { %v1686_v2 = vpop.xlane.xlu0 %1685  ;;  %2087 = vmatmul.msk.f32.vlgmr.msra.gmra.mxu2 %vm1695_vm6, %v1693_v0 }
0x16d1   :  { %2215 = vrcp.f32 %v1686_v2  ;;  %v1933_v2 = vld [vmem:[%s3056_s9 + $0x10] sm:$0xff] }
0x16d2   :  { %1957 = vmatpush.msrb.mxu2 %v1933_v2 }
0x16d4   :  { %v2212_v6 = vpop.eup %2211 }
0x16d5   :  { %v2214_v7 = vpop.eup %2213  ;;  %v1691_v8 = vmul.f32 %v2212_v6, %v2206_v21  ;;  %v1932_v6 = vld [vmem:[%s3056_s9 + $0x8] sm:$0xff] }
0x16d6   :  { %v1692_v63 = vmul.f32 %v2214_v7, %v2204_v38  ;;  %1958 = vmatpush.msrb.mxu2 %v1932_v6  ;;  %v1931_v7 = vld [vmem:[%s3056_s9] sm:$0xff] }
0x16d7   :  { %v2216_v10 = vpop.eup %2215  ;;  %2083 = vmatmul.msk.f32.vlgmr.msra.gmra.mxu0 %vm1695_vm6, %v1691_v8  ;;  %v2133_v8 = vld [vmem:[%s3052_s5 + $0x3] ss:$0 sm:$0xff] }
0x16d8   :  { %v1694_v12 = vmul.f32 %v2216_v10, %v2208_v11  ;;  %2085 = vmatmul.msk.f32.vlgmr.msrb.gmra.mxu1 %vm1695_vm6, %v1692_v63  ;;  %1959 = vmatpush.msrb.mxu2 %v1931_v7 }
0x16da   :  { %2089 = vmatmul.msk.f32.vlgmr.msra.gmra.mxu3 %vm1695_vm6, %v1694_v12 }
0x1753   :  { %v1771_v51 = vpop.f32.mrf.mxu2 }
0x1754   :  { %v1800_v14 = vrot.slane %v1771_v51, 4  ;;  %v1719_v15 = vpop.f32.mrf.mxu0  ;;  %v2134_v51 = vld [vmem:[%s3052_s5 + $0x4] ss:$0 sm:$0xff] }
0x1755   :  { %v1745_v61 = vpop.f32.mrf.mxu1 }
0x1756   :  { %v1801_v16 = vsel %vm1352_vm3, %v1800_v14, %v1719_v15 }
0x1757   :  { %v1805_v3 = vperm.slane %v1801_v16, %v2884_v56  ;;  %v2135_v16 = vld [vmem:[%s3052_s5 + $0x5] ss:$0 sm:$0xff] }
0x1759   :  { %v1814_v20 = vrot.slane %v1805_v3, 4 }
0x175d   :  { %v1797_v57 = vpop.f32.mrf.mxu3 }
0x175e   :  { %v1806_v19 = vrot.slane %v1797_v57, 4 }
0x1760   :  { %v1807_v46 = vsel %vm1352_vm3, %v1806_v19, %v1745_v61  ;;  %v2136_v61 = vld [vmem:[%s3052_s5 + $0x6] ss:$0 sm:$0xff] }
0x1761   :  { %v1811_v38 = vperm.slane %v1807_v46, %v2884_v56 }
0x1763   :  { %v1812_v21 = vrot.slane %v1811_v38, 4  ;;  %v1815_v18 = vsel %vm1352_vm3, %v1811_v38, %v1814_v20 }
0x1764   :  { %v1823_v22 = vperm.slane %v1815_v18, %v2892_v50 }
0x1765   :  { %v1813_v11 = vsel %vm1352_vm3, %v1812_v21, %v1805_v3 }
0x1766   :  { %v1819_v9 = vperm.slane %v1813_v11, %v2892_v50  ;;  %v1826_v25 = vrot.slane %v1823_v22, 4 }
0x1768   :  { %v1827_v26 = vsel %vm1352_vm3, 0.0, %v1826_v25  ;;  %v1824_v30 = vrot.slane %v1819_v9, 4  ;;  %v1828_v31 = vsel %vm1352_vm3, %v1826_v25, %v1819_v9 }
0x1769   :  { %v1833_v33 = vrot.slane %v1827_v26, 4  ;;  %v1832_v24 = vperm.slane %v1828_v31, %v2884_v56 }
0x176a   :  { %v1825_v34 = vsel %vm1352_vm3, 0.0, %v1824_v30 }
0x176b   :  { %v1834_v23 = vsel %vm1352_vm3, %v1833_v33, %v1825_v34  ;;  %v1841_v27 = vrot.slane %v1832_v24, 4 }
0x176c   :  { %v1838_v17 = vperm.slane %v1834_v23, %v2884_v56  ;;  %v1875_v56 = vld [vmem:[#allocation8 + $0x18] sm:$0xff] }
0x176d   :  { %1893 = vmatpush.msrb.mxu0 %v1875_v56 }
0x176e   :  { %v1842_v32 = vsel %vm1352_vm3, %v1838_v17, %v1841_v27  ;;  %v1839_v36 = vrot.slane %v1838_v17, 4 }
0x176f   :  { %v1850_v28 = vperm.slane %v1842_v32, %v2892_v50  ;;  %1894 = vmatpush.msrb.mxu0 %v1874_v39 }
0x1770   :  { %v1840_v29 = vsel %vm1352_vm3, %v1839_v36, %v1832_v24 }
0x1771   :  { %1860 = vrot.lane.b32.xlu2 %v1850_v28, %s2364_s18  ;;  %v1853_v35 = vrot.slane %v1850_v28, 4  ;;  %v1846_v40 = vperm.slane %v1840_v29, %v2892_v50  ;;  %1895 = vmatpush.msrb.mxu0 %v1873_v41 }
0x1773   :  { %v1854_v37 = vsel %vm1352_vm3, 0.0, %v1853_v35  ;;  %v1851_v48 = vrot.slane %v1846_v40, 4  ;;  %1896 = vmatpush.msrb.mxu0 %v1872_v42 }
0x1774   :  { %1864 = vrot.lane.b32.xlu1 %v1854_v37, %s2365_s13 }
0x1775   :  { %v1852_v47 = vsel %vm1352_vm3, 0.0, %v1851_v48 }
0x1776   :  { %1856 = vrot.lane.b32.xlu0 %v1852_v47, %s2351_s28 }
0x17cb   :  { %v1861_v43 = vpop.permute.xlu2 %1860 }
0x17e6   :  { %v1865_v44 = vpop.permute.xlu1 %1864 }
0x17e8   :  { %v1857_v50 = vpop.permute.xlu0 %1856 }
0x17e9   :  { %v1867_v4 = vsel %vm1541_vm4, %v1846_v40, %v1857_v50 }
0x17ea   :  { %v1869_v45 = vsel %vm1868_vm7, %v1867_v4, %v1861_v43 }
0x17eb   :  { %v1871_v49 = vsel %vm1870_vm8, %v1869_v45, %v1865_v44 }
0x17ec   :  { %2090 = vmatmul.msk.f32.vlgmr.msrb.gmra.mxu0 %vm466_vm2, %v1871_v49 }
0x1869   :  { %v1898_v0 = vpop.f32.mrf.mxu0 }
0x186a   :  { %v1899_v1 = vadd.f32 %v2132_v62, %v1898_v0 }
0x186c   :  { %2091 = vmatmul.msk.f32.vlgmr.msra.gmra.mxu1 %vm466_vm2, %v1899_v1 }
0x18e9   :  { %v1927_v63 = vpop.f32.mrf.mxu1 }
0x18ea   :  { %v1928_v10 = vadd.f32 %v2133_v8, %v1927_v63 }
0x18ec   :  { %v1930_v12 = vmax.f32 %v1928_v10, 0.0 }
0x18ee   :  { %2092 = vmatmul.msk.f32.vlgmr.msrb.gmra.mxu2 %vm409_vm1, %v1930_v12 }
0x1971   :  { %v1961_v14 = vpop.f32.mrf.mxu2 }
0x1972   :  { %v1962_v15 = vadd.f32 %v2134_v51, %v1961_v14 }
0x1974   :  { %v1964_v3 = vmax.f32 %v1962_v15, 0.0 }
0x1976   :  { %v1967_v57 = vmul.f32 %v2135_v16, %v1964_v3 }
0x1978   :  { %v1969_v19 = vsel %vm1968_vm9, %v1967_v57, 0.0 }
0x1979   :  { %1970 = vadd.xlane.f32.xlu0 %v1969_v19 }
0x19ec   :  { %v1971_v46 = vpop.xlane.xlu0 %1970 }
0x19ed   :  { %v1974_v20 = vadd.f32 %v2136_v61, %v1971_v46 }
0x19ef   :  { %v1975_v38 = vmul.f32 0.5, %v1974_v20 }
0x19f1   :  { %2217 = vtanh.f32 %v1975_v38 }
0x19f7   :  { %v2218_v21 = vpop.eup %2217 }
0x19f8   :  { %v1977_v18 = vadd.f32 1.0, %v2218_v21 }
0x19fa   :  { %v1978_v22 = vmul.f32 0.5, %v1977_v18 }
0x19fc   :  { %1980 = vst.msk [vmem:[%s3057_s10] sm:$0xf] %vm1979_vm10, %v1978_v22 }
0x19fd   :  { %1985 = vsyncpa [#allocation4], 1 }
0x19fe   :  { %1986 = vsyncpa [#allocation6], 1 }
0x19ff   :  { %1987 = vsyncpa [#allocation9], 1 }

</bundles_post_ra>
